<compile_context>
chip_gen: v6e
topology: v6e:2x2x1
jax: 0.10.0
libtpu: 0.0.40
codegen_flags: <defaults>
</compile_context>

<pallas_src>
import math
import numpy as np
import jax
import jax.numpy as jnp
from jax.experimental import pallas as pl
from jax.experimental.pallas import tpu as pltpu

BN_EPS = 1e-5  # nn.BatchNorm1d default eps
_INV_SQRT2 = 1.0 / math.sqrt(2.0)


def _tensorcores_per_chip():
    """2 on multi-TensorCore chips (v7x; v4/v5p megacore), else 1."""
    try:
        dev = jax.devices()[0]
        if dev.platform != "tpu":
            return 1
        kind = dev.device_kind.lower()
    except Exception:
        return 1
    if ("v7" in kind) or ("7x" in kind) or ("v4" in kind) or ("v5p" in kind):
        return 2
    return 1


def _bn_eval(v, bn):
    # bn rows: [gamma, beta, running_mean, running_var]; eval-mode BatchNorm1d
    gamma, beta, rm, rv = bn[0:1, :], bn[1:2, :], bn[2:3, :], bn[3:4, :]
    return (v - rm) * (gamma * jax.lax.rsqrt(rv + BN_EPS)) + beta


def make_kernel(d_model, n_heads, d_ff):
    d = d_model
    dk = d // n_heads

    def kernel(x_ref, cross_ref, wrows_ref, wcols_ref, vecs_ref, o_ref):
        Bblk, Lq, _ = x_ref.shape
        Lkv = cross_ref.shape[1]
        BLq, BLk = Bblk * Lq, Bblk * Lkv

        # Flatten (Bblk, L, d) -> (Bblk*L, d): every matmul gets M = Bblk*L rows.
        xf = x_ref[...].reshape(BLq, d)
        cf = cross_ref[...].reshape(BLk, d)

        # --- packed weight slabs: static ref slices (lane/sublane aligned) ----
        wkv = wrows_ref[:, 0:2 * d]              # (d, 2d)   fused K|V projection
        w1 = wrows_ref[:, 2 * d:2 * d + d_ff]    # (d, d_ff) MLP fc1
        wq = wcols_ref[0:d, :]                   # (d, d)    Q proj (scale folded)
        wo = wcols_ref[d:2 * d, :]               # (d, d)    attn output proj
        w2 = wcols_ref[2 * d:2 * d + d_ff, :]    # (d_ff, d) MLP fc2

        bq = vecs_ref[0:1, 0:d]
        bkv = vecs_ref[1:2, 0:2 * d]
        b1 = vecs_ref[2:3, 0:d_ff]
        n2_sc, n2_sh = vecs_ref[3:4, 0:d], vecs_ref[4:5, 0:d]
        n3_sc, n3_sh = vecs_ref[5:6, 0:d], vecs_ref[6:7, 0:d]

        # --- projections: one Q matmul + one fused, lane-dense K|V matmul -----
        # TODO(synk): on v6e/v7x with relaxed tolerance, cast matmul operands to
        # bf16 (keep preferred_element_type=f32) for MXU peak; kept f32 here.
        q = jnp.dot(xf, wq, preferred_element_type=jnp.float32) + bq
        kv = jnp.dot(cf, wkv, preferred_element_type=jnp.float32) + bkv

        qb = q.reshape(Bblk, Lq, d)
        kb = kv[:, 0:d].reshape(Bblk, Lkv, d)
        vb = kv[:, d:2 * d].reshape(Bblk, Lkv, d)

        # --- per-head attention, batched over the Bblk sequences of this block.
        # Head outputs are lane-concatenated and pushed through ONE output
        # projection matmul (no per-head K=dk-padded MXU passes, no adds).
        heads = []
        for h in range(n_heads):
            lo = h * dk
            qh = qb[:, :, lo:lo + dk]
            kh = kb[:, :, lo:lo + dk]
            vh = vb[:, :, lo:lo + dk]
            s = jnp.einsum('bqd,bkd->bqk', qh, kh,
                           preferred_element_type=jnp.float32)
            s = s - jnp.max(s, axis=-1, keepdims=True)
            p = jnp.exp(s)
            # Exact reciprocal: approx=True's ~2^-12 error is the same order as
            # the validation tolerance.
            p = p * pl.reciprocal(jnp.sum(p, axis=-1, keepdims=True), approx=False)
            # TODO(synk): attn_dropout (p=0.2) is stochastic; eval-mode identity here.
            oh = jnp.einsum('bqk,bkd->bqd', p, vh,
                            preferred_element_type=jnp.float32)
            heads.append(oh.reshape(BLq, dk))
        attn = jnp.dot(jnp.concatenate(heads, axis=-1), wo,
                       preferred_element_type=jnp.float32)

        # x_cross = dropout(norm2(attn)) + x ; norm2 is a folded affine (wo bias
        # folded into the shift), dropout is eval-mode identity.
        x_cross = attn * n2_sc + n2_sh + xf

        # CMlp: 1x1 Conv1d == per-position linear; exact (erf) GELU to match
        # nn.GELU() numerics (tanh-approx would free VALU slots but diverges).
        h1 = jnp.dot(x_cross, w1, preferred_element_type=jnp.float32) + b1
        h1 = 0.5 * h1 * (1.0 + jax.lax.erf(h1 * _INV_SQRT2))
        h2 = jnp.dot(h1, w2, preferred_element_type=jnp.float32)

        # x_ff = norm3(MLP(x_cross)) + x_cross (fc2 bias folded into norm3 shift)
        x_ff = h2 * n3_sc + n3_sh + x_cross
        o_ref[...] = x_ff.reshape(Bblk, Lq, d).astype(o_ref.dtype)

    return kernel


def _prep_inputs(params, d_model, n_heads, d_ff):
    """One-time wrapper-side folding + packing into 3 weight slabs."""
    dk = d_model // n_heads
    scale = dk ** -0.5
    wqkv = params['wqkv']
    bqkv = params['bqkv'][0]

    wq = wqkv[:, :d_model] * scale               # fold 1/sqrt(dk) into Q proj
    bq = bqkv[:d_model] * scale
    wkv = wqkv[:, d_model:]                      # fused K|V weight (d, 2d)
    bkv = bqkv[d_model:]
    wo = params['wo']
    w1, b1 = params['w1'], params['b1'][0]
    w2, b2 = params['w2'], params['b2'][0]

    def bn_affine(bn):
        gamma, beta, rm, rv = bn[0], bn[1], bn[2], bn[3]
        sc = gamma * jax.lax.rsqrt(rv + BN_EPS)
        return sc, beta - rm * sc

    sc2, sh2 = bn_affine(params['bn2'])
    sh2 = sh2 + params['bo'][0] * sc2            # fold wo bias into norm2 shift
    sc3, sh3 = bn_affine(params['bn3'])
    sh3 = sh3 + b2 * sc3                         # fold fc2 bias into norm3 shift

    # Pack 12 small arrays into 3 slabs (fewer input DMA streams / less fixed
    # pipeline cost); all in-kernel slices start at aligned offsets.
    w_rows = jnp.concatenate([wkv, w1], axis=1)      # (d, 2d + d_ff)
    w_cols = jnp.concatenate([wq, wo, w2], axis=0)   # (2d + d_ff, d)
    width = max(2 * d_model, d_ff)

    def row(v):
        return jnp.pad(v, (0, width - v.shape[0]))[None, :]

    vecs = jnp.concatenate(
        [row(bq), row(bkv), row(b1), row(sc2), row(sh2), row(sc3), row(sh3),
         jnp.zeros((1, width), jnp.float32)], axis=0)  # (8, width)
    return w_rows, w_cols, vecs


def _full_spec(a):
    n = a.ndim
    return pl.BlockSpec(a.shape, lambda b, _n=n: (0,) * _n)


def decoder_layer_forward(x, cross, params, n_heads):
    batch, n_vars, Lq, d = x.shape
    Lkv = cross.shape[2]
    d_ff = params['w1'].shape[1]
    BNv = batch * n_vars

    xr = x.reshape(BNv, Lq, d)
    crr = cross.reshape(BNv, Lkv, d)

    # Generation-aware grid: split batch*n_vars into 2 "parallel" steps only on
    # chips with 2 TensorCores; on single-TC chips (v5e/v6e) a multi-step grid
    # is a serial loop that just adds per-step overhead and halves matmul M.
    nblk = _tensorcores_per_chip()
    if nblk > 1:
        BNv_pad = -(-BNv // nblk) * nblk     # pad odd BNv instead of idling a TC
        if BNv_pad != BNv:
            padn = BNv_pad - BNv
            xr = jnp.concatenate([xr, jnp.zeros((padn, Lq, d), xr.dtype)], axis=0)
            crr = jnp.concatenate([crr, jnp.zeros((padn, Lkv, d), crr.dtype)], axis=0)
    else:
        BNv_pad = BNv
    Bblk = BNv_pad // nblk

    w_rows, w_cols, vecs = _prep_inputs(params, d, n_heads, d_ff)

    # NOTE(layout): each grid step's output block (Bblk, Lq, d) is one
    # contiguous HBM slab. A 128-lane-dense store would need an in-kernel
    # cross-row relayout for d_model=64 (exactly the XLU repack to avoid); the
    # real fix is padding d_model to 128 at the model level, so the natural
    # layout is kept here.
    out = pl.pallas_call(
        make_kernel(d, n_heads, d_ff),
        out_shape=jax.ShapeDtypeStruct((BNv_pad, Lq, d), x.dtype),
        grid=(nblk,),
        in_specs=[
            pl.BlockSpec((Bblk, Lq, d), lambda b: (b, 0, 0)),
            pl.BlockSpec((Bblk, Lkv, d), lambda b: (b, 0, 0)),
            _full_spec(w_rows), _full_spec(w_cols), _full_spec(vecs),
        ],
        out_specs=pl.BlockSpec((Bblk, Lq, d), lambda b: (b, 0, 0)),
        # Defaults comfortably cover this footprint; when scaling Bblk/Lkv/d_ff,
        # re-budget against v7x's 64 MiB VMEM and set vmem_limit_bytes here.
        compiler_params=pltpu.CompilerParams(dimension_semantics=("parallel",)),
    )(xr, crr, w_rows, w_cols, vecs)

    return out[:BNv].reshape(batch, n_vars, Lq, d)


def reference_forward(x, cross, params, n_heads):
    """Pure-JAX reference mirroring the PyTorch forward (eval mode)."""
    batch, n_vars, Lq, d = x.shape
    BNv = batch * n_vars
    xr = x.reshape(BNv, Lq, d)
    crr = cross.reshape(BNv, -1, d)
    Lkv = crr.shape[1]
    dk = d // n_heads

    wqkv, bqkv = params['wqkv'], params['bqkv'][0]
    q = xr @ wqkv[:, :d] + bqkv[:d]
    k = crr @ wqkv[:, d:2 * d] + bqkv[d:2 * d]
    v = crr @ wqkv[:, 2 * d:] + bqkv[2 * d:]
    q = q.reshape(BNv, Lq, n_heads, dk).transpose(0, 2, 1, 3)
    k = k.reshape(BNv, Lkv, n_heads, dk).transpose(0, 2, 1, 3)
    v = v.reshape(BNv, Lkv, n_heads, dk).transpose(0, 2, 1, 3)
    s = jnp.einsum('bhqd,bhkd->bhqk', q, k) * (dk ** -0.5)
    p = jax.nn.softmax(s, axis=-1)
    attn = jnp.einsum('bhqk,bhkd->bhqd', p, v).transpose(0, 2, 1, 3).reshape(BNv, Lq, d)
    attn = attn @ params['wo'] + params['bo'][0]

    x_cross = _bn_eval(attn, params['bn2']) + xr
    h1 = x_cross @ params['w1'] + params['b1'][0]
    h1 = jax.nn.gelu(h1, approximate=False)
    h2 = h1 @ params['w2'] + params['b2'][0]
    x_ff = _bn_eval(h2, params['bn3']) + x_cross
    return x_ff.reshape(batch, n_vars, Lq, d)


def init_params(key, d_model, n_heads, d_ff):
    ks = jax.random.split(key, 10)
    s = 0.05
    params = {
        'wqkv': jax.random.normal(ks[0], (d_model, 3 * d_model), jnp.float32) * s,
        'bqkv': jax.random.normal(ks[1], (1, 3 * d_model), jnp.float32) * s,
        'wo':   jax.random.normal(ks[2], (d_model, d_model), jnp.float32) * s,
        'bo':   jax.random.normal(ks[3], (1, d_model), jnp.float32) * s,
        # CMlp fc1 / fc2 (1x1 Conv1d) stored as (in, out) matrices
        'w1':   jax.random.normal(ks[5], (d_model, d_ff), jnp.float32) * s,
        'b1':   jax.random.normal(ks[6], (1, d_ff), jnp.float32) * s,
        'w2':   jax.random.normal(ks[7], (d_ff, d_model), jnp.float32) * s,
        'b2':   jax.random.normal(ks[8], (1, d_model), jnp.float32) * s,
    }

    def bn_params(k):
        k1, k2, k3, k4 = jax.random.split(k, 4)
        gamma = 1.0 + 0.1 * jax.random.normal(k1, (d_model,), jnp.float32)
        beta = 0.1 * jax.random.normal(k2, (d_model,), jnp.float32)
        rm = 0.1 * jax.random.normal(k3, (d_model,), jnp.float32)
        rv = jax.random.uniform(k4, (d_model,), jnp.float32, minval=0.5, maxval=1.5)
        return jnp.stack([gamma, beta, rm, rv], axis=0)  # (4, d_model)

    params['bn2'] = bn_params(ks[4])
    params['bn3'] = bn_params(ks[9])
    return params


if __name__ == "__main__":
    batch, n_vars, num_patch, d_model = 2, 2, 8, 64
    n_heads, d_ff, cross_len = 4, 128, 16

    key = jax.random.PRNGKey(0)
    kx, kc, kp = jax.random.split(key, 3)
    x = jax.random.normal(kx, (batch, n_vars, num_patch, d_model), jnp.float32)
    cross = jax.random.normal(kc, (batch, n_vars, cross_len, d_model), jnp.float32)
    params = init_params(kp, d_model, n_heads, d_ff)

    out = decoder_layer_forward(x, cross, params, n_heads)
    out = jax.block_until_ready(out)

    ref = reference_forward(x, cross, params, n_heads)
    np.testing.assert_allclose(np.asarray(out), np.asarray(ref), rtol=2e-4, atol=2e-4)
    print("KERNEL_OK")
</pallas_src>

<mosaic_0001>
module attributes {stable_mosaic.version = 11 : i64} {
  func.func @kernel(%arg0: i32, %arg1: memref<4x8x64xf32, #tpu.memory_space<vmem>>, %arg2: memref<4x16x64xf32, #tpu.memory_space<vmem>>, %arg3: memref<64x256xf32, #tpu.memory_space<vmem>>, %arg4: memref<256x64xf32, #tpu.memory_space<vmem>>, %arg5: memref<8x128xf32, #tpu.memory_space<vmem>>, %arg6: memref<4x8x64xf32, #tpu.memory_space<vmem>>) attributes {dimension_semantics = [#tpu.dimension_semantics<parallel>], iteration_bounds = array<i64: 1>, scalar_prefetch = 0 : i64, scratch_operands = 0 : i64, tpu.core_type = #tpu.core_type<tc>, window_params = [{transform_indices = @transform_0, window_bounds = array<i64: 4, 8, 64>}, {transform_indices = @transform_1, window_bounds = array<i64: 4, 16, 64>}, {pipeline_mode = #tpu.pipeline_mode<synchronous>, transform_indices = @transform_2, window_bounds = array<i64: 64, 256>}, {pipeline_mode = #tpu.pipeline_mode<synchronous>, transform_indices = @transform_3, window_bounds = array<i64: 256, 64>}, {pipeline_mode = #tpu.pipeline_mode<synchronous>, transform_indices = @transform_4, window_bounds = array<i64: 8, 128>}, {transform_indices = @transform_5, window_bounds = array<i64: 4, 8, 64>}]} {
    %c0 = arith.constant 0 : index
    %c0_0 = arith.constant 0 : index
    %c0_1 = arith.constant 0 : index
    %0 = vector.load %arg1[%c0, %c0_0, %c0_1] : memref<4x8x64xf32, #tpu.memory_space<vmem>>, vector<4x8x64xf32>
    %1 = vector.shape_cast %0 : vector<4x8x64xf32> to vector<32x64xf32>
    %c0_2 = arith.constant 0 : index
    %c0_3 = arith.constant 0 : index
    %c0_4 = arith.constant 0 : index
    %2 = vector.load %arg2[%c0_2, %c0_3, %c0_4] : memref<4x16x64xf32, #tpu.memory_space<vmem>>, vector<4x16x64xf32>
    %3 = vector.shape_cast %2 : vector<4x16x64xf32> to vector<64x64xf32>
    %c0_5 = arith.constant 0 : index
    %c0_6 = arith.constant 0 : index
    %4 = vector.load %arg3[%c0_5, %c0_6] : memref<64x256xf32, #tpu.memory_space<vmem>>, vector<64x128xf32>
    %c0_7 = arith.constant 0 : index
    %c128 = arith.constant 128 : index
    %5 = vector.load %arg3[%c0_7, %c128] : memref<64x256xf32, #tpu.memory_space<vmem>>, vector<64x128xf32>
    %c0_8 = arith.constant 0 : index
    %c0_9 = arith.constant 0 : index
    %6 = vector.load %arg4[%c0_8, %c0_9] : memref<256x64xf32, #tpu.memory_space<vmem>>, vector<64x64xf32>
    %c64 = arith.constant 64 : index
    %c0_10 = arith.constant 0 : index
    %7 = vector.load %arg4[%c64, %c0_10] : memref<256x64xf32, #tpu.memory_space<vmem>>, vector<64x64xf32>
    %c128_11 = arith.constant 128 : index
    %c0_12 = arith.constant 0 : index
    %8 = vector.load %arg4[%c128_11, %c0_12] : memref<256x64xf32, #tpu.memory_space<vmem>>, vector<128x64xf32>
    %c0_13 = arith.constant 0 : index
    %c0_14 = arith.constant 0 : index
    %9 = vector.load %arg5[%c0_13, %c0_14] : memref<8x128xf32, #tpu.memory_space<vmem>>, vector<1x64xf32>
    %c1 = arith.constant 1 : index
    %c0_15 = arith.constant 0 : index
    %10 = vector.load %arg5[%c1, %c0_15] : memref<8x128xf32, #tpu.memory_space<vmem>>, vector<1x128xf32>
    %c2 = arith.constant 2 : index
    %c0_16 = arith.constant 0 : index
    %11 = vector.load %arg5[%c2, %c0_16] : memref<8x128xf32, #tpu.memory_space<vmem>>, vector<1x128xf32>
    %c3 = arith.constant 3 : index
    %c0_17 = arith.constant 0 : index
    %12 = vector.load %arg5[%c3, %c0_17] : memref<8x128xf32, #tpu.memory_space<vmem>>, vector<1x64xf32>
    %c4 = arith.constant 4 : index
    %c0_18 = arith.constant 0 : index
    %13 = vector.load %arg5[%c4, %c0_18] : memref<8x128xf32, #tpu.memory_space<vmem>>, vector<1x64xf32>
    %c5 = arith.constant 5 : index
    %c0_19 = arith.constant 0 : index
    %14 = vector.load %arg5[%c5, %c0_19] : memref<8x128xf32, #tpu.memory_space<vmem>>, vector<1x64xf32>
    %c6 = arith.constant 6 : index
    %c0_20 = arith.constant 0 : index
    %15 = vector.load %arg5[%c6, %c0_20] : memref<8x128xf32, #tpu.memory_space<vmem>>, vector<1x64xf32>
    %cst = arith.constant dense<0.000000e+00> : vector<32x64xf32>
    %16 = tpu.matmul %1, %6, %cst {dimension_numbers = #tpu.dot_dimension_numbers<[1], [0], [0], [1], [0, 0, 1, 1], [], []>} : vector<32x64xf32>, vector<64x64xf32>, vector<32x64xf32> -> vector<32x64xf32>
    %17 = vector.broadcast %9 : vector<1x64xf32> to vector<32x64xf32>
    %18 = arith.addf %16, %17 : vector<32x64xf32>
    %cst_21 = arith.constant dense<0.000000e+00> : vector<64x128xf32>
    %19 = tpu.matmul %3, %4, %cst_21 {dimension_numbers = #tpu.dot_dimension_numbers<[1], [0], [0], [1], [0, 0, 1, 1], [], []>} : vector<64x64xf32>, vector<64x128xf32>, vector<64x128xf32> -> vector<64x128xf32>
    %20 = vector.broadcast %10 : vector<1x128xf32> to vector<64x128xf32>
    %21 = arith.addf %19, %20 : vector<64x128xf32>
    %22 = vector.shape_cast %18 : vector<32x64xf32> to vector<4x8x64xf32>
    %23 = vector.extract_strided_slice %21 {offsets = [0, 0], sizes = [64, 64], strides = [1, 1]} : vector<64x128xf32> to vector<64x64xf32>
    %24 = vector.shape_cast %23 : vector<64x64xf32> to vector<4x16x64xf32>
    %25 = vector.extract_strided_slice %21 {offsets = [0, 64], sizes = [64, 64], strides = [1, 1]} : vector<64x128xf32> to vector<64x64xf32>
    %26 = vector.shape_cast %25 : vector<64x64xf32> to vector<4x16x64xf32>
    %27 = vector.extract_strided_slice %22 {offsets = [0, 0, 0], sizes = [4, 8, 16], strides = [1, 1, 1]} : vector<4x8x64xf32> to vector<4x8x16xf32>
    %28 = vector.extract_strided_slice %24 {offsets = [0, 0, 0], sizes = [4, 16, 16], strides = [1, 1, 1]} : vector<4x16x64xf32> to vector<4x16x16xf32>
    %29 = vector.extract_strided_slice %26 {offsets = [0, 0, 0], sizes = [4, 16, 16], strides = [1, 1, 1]} : vector<4x16x64xf32> to vector<4x16x16xf32>
    "tpu.trace_start"() <{level = 10 : i32, message = "bqd,bkd->bqk"}> : () -> ()
    %cst_22 = arith.constant dense<0.000000e+00> : vector<4x8x16xf32>
    %30 = tpu.matmul %27, %28, %cst_22 {dimension_numbers = #tpu.dot_dimension_numbers<[2], [2], [1], [1], [0, 0, 0, 1, 1, 1], [0], [0]>} : vector<4x8x16xf32>, vector<4x16x16xf32>, vector<4x8x16xf32> -> vector<4x8x16xf32>
    "tpu.trace_stop"() : () -> ()
    %cst_23 = arith.constant dense<0xFF800000> : vector<4x8xf32>
    %31 = vector.multi_reduction <maximumf>, %30, %cst_23 [2] : vector<4x8x16xf32> to vector<4x8xf32>
    %32 = vector.shape_cast %31 : vector<4x8xf32> to vector<4x8x1xf32>
    %33 = vector.broadcast %32 : vector<4x8x1xf32> to vector<4x8x16xf32>
    %34 = arith.subf %30, %33 : vector<4x8x16xf32>
    %35 = math.exp %34 : vector<4x8x16xf32>
    %cst_24 = arith.constant dense<0.000000e+00> : vector<4x8xf32>
    %36 = vector.multi_reduction <add>, %35, %cst_24 [2] : vector<4x8x16xf32> to vector<4x8xf32>
    %37 = vector.shape_cast %36 : vector<4x8xf32> to vector<4x8x1xf32>
    %38 = tpu.reciprocal %37 : vector<4x8x1xf32> -> vector<4x8x1xf32>
    %39 = vector.broadcast %38 : vector<4x8x1xf32> to vector<4x8x16xf32>
    %40 = arith.mulf %35, %39 : vector<4x8x16xf32>
    "tpu.trace_start"() <{level = 10 : i32, message = "bqk,bkd->bqd"}> : () -> ()
    %cst_25 = arith.constant dense<0.000000e+00> : vector<4x8x16xf32>
    %41 = tpu.matmul %40, %29, %cst_25 {dimension_numbers = #tpu.dot_dimension_numbers<[2], [1], [1], [2], [0, 0, 0, 1, 1, 2], [0], [0]>} : vector<4x8x16xf32>, vector<4x16x16xf32>, vector<4x8x16xf32> -> vector<4x8x16xf32>
    "tpu.trace_stop"() : () -> ()
    %42 = vector.shape_cast %41 : vector<4x8x16xf32> to vector<32x16xf32>
    %43 = vector.extract_strided_slice %22 {offsets = [0, 0, 16], sizes = [4, 8, 16], strides = [1, 1, 1]} : vector<4x8x64xf32> to vector<4x8x16xf32>
    %44 = vector.extract_strided_slice %24 {offsets = [0, 0, 16], sizes = [4, 16, 16], strides = [1, 1, 1]} : vector<4x16x64xf32> to vector<4x16x16xf32>
    %45 = vector.extract_strided_slice %26 {offsets = [0, 0, 16], sizes = [4, 16, 16], strides = [1, 1, 1]} : vector<4x16x64xf32> to vector<4x16x16xf32>
    "tpu.trace_start"() <{level = 10 : i32, message = "bqd,bkd->bqk"}> : () -> ()
    %cst_26 = arith.constant dense<0.000000e+00> : vector<4x8x16xf32>
    %46 = tpu.matmul %43, %44, %cst_26 {dimension_numbers = #tpu.dot_dimension_numbers<[2], [2], [1], [1], [0, 0, 0, 1, 1, 1], [0], [0]>} : vector<4x8x16xf32>, vector<4x16x16xf32>, vector<4x8x16xf32> -> vector<4x8x16xf32>
    "tpu.trace_stop"() : () -> ()
    %cst_27 = arith.constant dense<0xFF800000> : vector<4x8xf32>
    %47 = vector.multi_reduction <maximumf>, %46, %cst_27 [2] : vector<4x8x16xf32> to vector<4x8xf32>
    %48 = vector.shape_cast %47 : vector<4x8xf32> to vector<4x8x1xf32>
    %49 = vector.broadcast %48 : vector<4x8x1xf32> to vector<4x8x16xf32>
    %50 = arith.subf %46, %49 : vector<4x8x16xf32>
    %51 = math.exp %50 : vector<4x8x16xf32>
    %cst_28 = arith.constant dense<0.000000e+00> : vector<4x8xf32>
    %52 = vector.multi_reduction <add>, %51, %cst_28 [2] : vector<4x8x16xf32> to vector<4x8xf32>
    %53 = vector.shape_cast %52 : vector<4x8xf32> to vector<4x8x1xf32>
    %54 = tpu.reciprocal %53 : vector<4x8x1xf32> -> vector<4x8x1xf32>
    %55 = vector.broadcast %54 : vector<4x8x1xf32> to vector<4x8x16xf32>
    %56 = arith.mulf %51, %55 : vector<4x8x16xf32>
    "tpu.trace_start"() <{level = 10 : i32, message = "bqk,bkd->bqd"}> : () -> ()
    %cst_29 = arith.constant dense<0.000000e+00> : vector<4x8x16xf32>
    %57 = tpu.matmul %56, %45, %cst_29 {dimension_numbers = #tpu.dot_dimension_numbers<[2], [1], [1], [2], [0, 0, 0, 1, 1, 2], [0], [0]>} : vector<4x8x16xf32>, vector<4x16x16xf32>, vector<4x8x16xf32> -> vector<4x8x16xf32>
    "tpu.trace_stop"() : () -> ()
    %58 = vector.shape_cast %57 : vector<4x8x16xf32> to vector<32x16xf32>
    %59 = vector.extract_strided_slice %22 {offsets = [0, 0, 32], sizes = [4, 8, 16], strides = [1, 1, 1]} : vector<4x8x64xf32> to vector<4x8x16xf32>
    %60 = vector.extract_strided_slice %24 {offsets = [0, 0, 32], sizes = [4, 16, 16], strides = [1, 1, 1]} : vector<4x16x64xf32> to vector<4x16x16xf32>
    %61 = vector.extract_strided_slice %26 {offsets = [0, 0, 32], sizes = [4, 16, 16], strides = [1, 1, 1]} : vector<4x16x64xf32> to vector<4x16x16xf32>
    "tpu.trace_start"() <{level = 10 : i32, message = "bqd,bkd->bqk"}> : () -> ()
    %cst_30 = arith.constant dense<0.000000e+00> : vector<4x8x16xf32>
    %62 = tpu.matmul %59, %60, %cst_30 {dimension_numbers = #tpu.dot_dimension_numbers<[2], [2], [1], [1], [0, 0, 0, 1, 1, 1], [0], [0]>} : vector<4x8x16xf32>, vector<4x16x16xf32>, vector<4x8x16xf32> -> vector<4x8x16xf32>
    "tpu.trace_stop"() : () -> ()
    %cst_31 = arith.constant dense<0xFF800000> : vector<4x8xf32>
    %63 = vector.multi_reduction <maximumf>, %62, %cst_31 [2] : vector<4x8x16xf32> to vector<4x8xf32>
    %64 = vector.shape_cast %63 : vector<4x8xf32> to vector<4x8x1xf32>
    %65 = vector.broadcast %64 : vector<4x8x1xf32> to vector<4x8x16xf32>
    %66 = arith.subf %62, %65 : vector<4x8x16xf32>
    %67 = math.exp %66 : vector<4x8x16xf32>
    %cst_32 = arith.constant dense<0.000000e+00> : vector<4x8xf32>
    %68 = vector.multi_reduction <add>, %67, %cst_32 [2] : vector<4x8x16xf32> to vector<4x8xf32>
    %69 = vector.shape_cast %68 : vector<4x8xf32> to vector<4x8x1xf32>
    %70 = tpu.reciprocal %69 : vector<4x8x1xf32> -> vector<4x8x1xf32>
    %71 = vector.broadcast %70 : vector<4x8x1xf32> to vector<4x8x16xf32>
    %72 = arith.mulf %67, %71 : vector<4x8x16xf32>
    "tpu.trace_start"() <{level = 10 : i32, message = "bqk,bkd->bqd"}> : () -> ()
    %cst_33 = arith.constant dense<0.000000e+00> : vector<4x8x16xf32>
    %73 = tpu.matmul %72, %61, %cst_33 {dimension_numbers = #tpu.dot_dimension_numbers<[2], [1], [1], [2], [0, 0, 0, 1, 1, 2], [0], [0]>} : vector<4x8x16xf32>, vector<4x16x16xf32>, vector<4x8x16xf32> -> vector<4x8x16xf32>
    "tpu.trace_stop"() : () -> ()
    %74 = vector.shape_cast %73 : vector<4x8x16xf32> to vector<32x16xf32>
    %75 = vector.extract_strided_slice %22 {offsets = [0, 0, 48], sizes = [4, 8, 16], strides = [1, 1, 1]} : vector<4x8x64xf32> to vector<4x8x16xf32>
    %76 = vector.extract_strided_slice %24 {offsets = [0, 0, 48], sizes = [4, 16, 16], strides = [1, 1, 1]} : vector<4x16x64xf32> to vector<4x16x16xf32>
    %77 = vector.extract_strided_slice %26 {offsets = [0, 0, 48], sizes = [4, 16, 16], strides = [1, 1, 1]} : vector<4x16x64xf32> to vector<4x16x16xf32>
    "tpu.trace_start"() <{level = 10 : i32, message = "bqd,bkd->bqk"}> : () -> ()
    %cst_34 = arith.constant dense<0.000000e+00> : vector<4x8x16xf32>
    %78 = tpu.matmul %75, %76, %cst_34 {dimension_numbers = #tpu.dot_dimension_numbers<[2], [2], [1], [1], [0, 0, 0, 1, 1, 1], [0], [0]>} : vector<4x8x16xf32>, vector<4x16x16xf32>, vector<4x8x16xf32> -> vector<4x8x16xf32>
    "tpu.trace_stop"() : () -> ()
    %cst_35 = arith.constant dense<0xFF800000> : vector<4x8xf32>
    %79 = vector.multi_reduction <maximumf>, %78, %cst_35 [2] : vector<4x8x16xf32> to vector<4x8xf32>
    %80 = vector.shape_cast %79 : vector<4x8xf32> to vector<4x8x1xf32>
    %81 = vector.broadcast %80 : vector<4x8x1xf32> to vector<4x8x16xf32>
    %82 = arith.subf %78, %81 : vector<4x8x16xf32>
    %83 = math.exp %82 : vector<4x8x16xf32>
    %cst_36 = arith.constant dense<0.000000e+00> : vector<4x8xf32>
    %84 = vector.multi_reduction <add>, %83, %cst_36 [2] : vector<4x8x16xf32> to vector<4x8xf32>
    %85 = vector.shape_cast %84 : vector<4x8xf32> to vector<4x8x1xf32>
    %86 = tpu.reciprocal %85 : vector<4x8x1xf32> -> vector<4x8x1xf32>
    %87 = vector.broadcast %86 : vector<4x8x1xf32> to vector<4x8x16xf32>
    %88 = arith.mulf %83, %87 : vector<4x8x16xf32>
    "tpu.trace_start"() <{level = 10 : i32, message = "bqk,bkd->bqd"}> : () -> ()
    %cst_37 = arith.constant dense<0.000000e+00> : vector<4x8x16xf32>
    %89 = tpu.matmul %88, %77, %cst_37 {dimension_numbers = #tpu.dot_dimension_numbers<[2], [1], [1], [2], [0, 0, 0, 1, 1, 2], [0], [0]>} : vector<4x8x16xf32>, vector<4x16x16xf32>, vector<4x8x16xf32> -> vector<4x8x16xf32>
    "tpu.trace_stop"() : () -> ()
    %90 = vector.shape_cast %89 : vector<4x8x16xf32> to vector<32x16xf32>
    %91 = tpu.concatenate %42, %58, %74, %90 in 1 : vector<32x16xf32>, vector<32x16xf32>, vector<32x16xf32>, vector<32x16xf32> -> vector<32x64xf32>
    %cst_38 = arith.constant dense<0.000000e+00> : vector<32x64xf32>
    %92 = tpu.matmul %91, %7, %cst_38 {dimension_numbers = #tpu.dot_dimension_numbers<[1], [0], [0], [1], [0, 0, 1, 1], [], []>} : vector<32x64xf32>, vector<64x64xf32>, vector<32x64xf32> -> vector<32x64xf32>
    %93 = vector.broadcast %12 : vector<1x64xf32> to vector<32x64xf32>
    %94 = arith.mulf %92, %93 : vector<32x64xf32>
    %95 = vector.broadcast %13 : vector<1x64xf32> to vector<32x64xf32>
    %96 = arith.addf %94, %95 : vector<32x64xf32>
    %97 = arith.addf %96, %1 : vector<32x64xf32>
    %cst_39 = arith.constant dense<0.000000e+00> : vector<32x128xf32>
    %98 = tpu.matmul %97, %5, %cst_39 {dimension_numbers = #tpu.dot_dimension_numbers<[1], [0], [0], [1], [0, 0, 1, 1], [], []>} : vector<32x64xf32>, vector<64x128xf32>, vector<32x128xf32> -> vector<32x128xf32>
    %99 = vector.broadcast %11 : vector<1x128xf32> to vector<32x128xf32>
    %100 = arith.addf %98, %99 : vector<32x128xf32>
    %cst_40 = arith.constant 5.000000e-01 : f32
    %101 = vector.broadcast %cst_40 : f32 to vector<32x128xf32>
    %102 = arith.mulf %101, %100 : vector<32x128xf32>
    %cst_41 = arith.constant 0.707106769 : f32
    %103 = vector.broadcast %cst_41 : f32 to vector<32x128xf32>
    %104 = arith.mulf %100, %103 : vector<32x128xf32>
    %105 = math.erf %104 : vector<32x128xf32>
    %cst_42 = arith.constant 1.000000e+00 : f32
    %106 = vector.broadcast %cst_42 : f32 to vector<32x128xf32>
    %107 = arith.addf %106, %105 : vector<32x128xf32>
    %108 = arith.mulf %102, %107 : vector<32x128xf32>
    %cst_43 = arith.constant dense<0.000000e+00> : vector<32x64xf32>
    %109 = tpu.matmul %108, %8, %cst_43 {dimension_numbers = #tpu.dot_dimension_numbers<[1], [0], [0], [1], [0, 0, 1, 1], [], []>} : vector<32x128xf32>, vector<128x64xf32>, vector<32x64xf32> -> vector<32x64xf32>
    %110 = vector.broadcast %14 : vector<1x64xf32> to vector<32x64xf32>
    %111 = arith.mulf %109, %110 : vector<32x64xf32>
    %112 = vector.broadcast %15 : vector<1x64xf32> to vector<32x64xf32>
    %113 = arith.addf %111, %112 : vector<32x64xf32>
    %114 = arith.addf %113, %97 : vector<32x64xf32>
    %115 = vector.shape_cast %114 : vector<32x64xf32> to vector<4x8x64xf32>
    %c0_44 = arith.constant 0 : index
    %c0_45 = arith.constant 0 : index
    %c0_46 = arith.constant 0 : index
    %116 = vector.load %arg6[%c0_44, %c0_45, %c0_46] : memref<4x8x64xf32, #tpu.memory_space<vmem>>, vector<4x8x64xf32>
    tpu.vector_store %arg6[%c0_44, %c0_45, %c0_46], %115 {strides = array<i32>} : memref<4x8x64xf32, #tpu.memory_space<vmem>>, vector<4x8x64xf32>,
    return
  }
  func.func @transform_0(%arg0: i32) -> (i32, i32, i32) {
    %c0_i32 = arith.constant 0 : i32
    %c0_i32_0 = arith.constant 0 : i32
    %c0_i32_1 = arith.constant 0 : i32
    return %arg0, %c0_i32, %c0_i32_0 : i32, i32, i32
  }
  func.func @transform_1(%arg0: i32) -> (i32, i32, i32) {
    %c0_i32 = arith.constant 0 : i32
    %c0_i32_0 = arith.constant 0 : i32
    %c0_i32_1 = arith.constant 0 : i32
    return %arg0, %c0_i32, %c0_i32_0 : i32, i32, i32
  }
  func.func @transform_2(%arg0: i32) -> (i32, i32) {
    %c0_i32 = arith.constant 0 : i32
    %c0_i32_0 = arith.constant 0 : i32
    %c0_i32_1 = arith.constant 0 : i32
    return %c0_i32, %c0_i32_0 : i32, i32
  }
  func.func @transform_3(%arg0: i32) -> (i32, i32) {
    %c0_i32 = arith.constant 0 : i32
    %c0_i32_0 = arith.constant 0 : i32
    %c0_i32_1 = arith.constant 0 : i32
    return %c0_i32, %c0_i32_0 : i32, i32
  }
  func.func @transform_4(%arg0: i32) -> (i32, i32) {
    %c0_i32 = arith.constant 0 : i32
    %c0_i32_0 = arith.constant 0 : i32
    %c0_i32_1 = arith.constant 0 : i32
    return %c0_i32, %c0_i32_0 : i32, i32
  }
  func.func @transform_5(%arg0: i32) -> (i32, i32, i32) {
    %c0_i32 = arith.constant 0 : i32
    %c0_i32_0 = arith.constant 0 : i32
    %c0_i32_1 = arith.constant 0 : i32
    return %arg0, %c0_i32, %c0_i32_0 : i32, i32, i32
  }
}

</mosaic_0001>

<bundles_post_ra>
// kernel: tpu_custom_call.1
= control target key start
LH: loop header
LB: loop body
LE: loop exit
PB: predicated region body
PF: predicated region fallthrough
CT: control target
= control target key end

     0   :  { %vm92_vm0 = vcmask 523264   ;;  %s4965_s0 = inlined_call_operand.vmem [shape: f32[4,8,64], index: 0, kind: input, shape index: {}]   ;;  %s4966_s1 = inlined_call_operand.vmem [shape: f32[4,16,64], index: 1, kind: input, shape index: {}]   ;;  %s4967_s2 = inlined_call_operand.vmem [shape: f32[64,256], index: 2, kind: input, shape index: {}]   ;;  %s4968_s3 = inlined_call_operand.vmem [shape: f32[256,64], index: 3, kind: input, shape index: {}]   ;;  %s4969_s4 = inlined_call_operand.vmem [shape: f32[8,128], index: 4, kind: input, shape index: {}]   ;;  %s4970_s5 = inlined_call_operand.hbm [shape: f32[4,8,64], index: 5, kind: output, shape index: {}]  }
   0x1   :  { %v56_v0 = vld [vmem:[%s4968_s3 + $0x38] sm:$0xff]  ;;  %v55_v1 = vld [vmem:[%s4968_s3 + $0x30] sm:$0xff]  ;;  %v54_v2 = vld [vmem:[%s4968_s3 + $0x28] sm:$0xff] }
   0x2   :  { %3748 = vmatprep.subr.mxu1 %v56_v0  ;;  %v21_v3 = vld [vmem:[%s4965_s0] sm:$0xff]  ;;  %v52_v5 = vld [vmem:[%s4968_s3 + $0x18] sm:$0xff]  ;;  %v51_v6 = vld [vmem:[%s4968_s3 + $0x10] sm:$0xff] }
   0x3   :  { %3749 = vmatpush3.msra.mxu1 %v56_v0  ;;  %3764 = vmatprep.mubr.msk.f32.mxu1 %vm92_vm0, %v21_v3  ;;  %v53_v4 = vld [vmem:[%s4968_s3 + $0x20] sm:$0xff] }
   0x4   :  { %3750 = vmatprep.subr.mxu1 %v55_v1 }
   0x5   :  { %3751 = vmatpush3.msra.mxu1 %v55_v1 }
   0x6   :  { %3752 = vmatprep.subr.mxu1 %v54_v2 }
   0x7   :  { %3753 = vmatpush3.msra.mxu1 %v54_v2 }
   0x8   :  { %3754 = vmatprep.subr.mxu1 %v53_v4 }
   0x9   :  { %3755 = vmatpush3.msra.mxu1 %v53_v4 }
   0xa   :  { %3756 = vmatprep.subr.mxu1 %v52_v5 }
   0xb   :  { %10 = vsyncpa [#allocation3], 0  ;;  %3757 = vmatpush3.msra.mxu1 %v52_v5  ;;  %v50_v7 = vld [vmem:[%s4968_s3 + $0x8] sm:$0xff]  ;;  %v49_v8 = vld [vmem:[%s4968_s3] sm:$0xff]  ;;  %v4214_v28 = vmov 0.0   ;;  %vm4215_vm1 = vmmov 0  }
   0xc   :  { %3758 = vmatprep.subr.mxu1 %v51_v6  ;;  %v22_v9 = vld [vmem:[%s4965_s0 + $0x8] sm:$0xff]  ;;  %v40_v10 = vld [vmem:[%s4967_s2 + $0x70] sm:$0xff]  ;;  %v39_v12 = vld [vmem:[%s4967_s2 + $0x60] sm:$0xff]  ;;  %3798 = vmatprep.subr.mxu0 %v4214_v28  ;;  %vm323_vm2 = vcmask 130048   ;;  %s4216_s25 = smov 64   ;;  %s4217_s28 = smov 112  }
   0xd   :  { %3759 = vmatpush3.msra.mxu1 %v51_v6  ;;  %v23_v11 = vld [vmem:[%s4965_s0 + $0x10] sm:$0xff]  ;;  %v24_v14 = vld [vmem:[%s4965_s0 + $0x18] sm:$0xff]  ;;  %v25_v15 = vld [vmem:[%s4966_s1] sm:$0xff]  ;;  %3802 = vmatprep.mubr.msk.f32.mxu0 %vm4215_vm1, %v4214_v28  ;;  %s4218_s29 = smov 48   ;;  %s4219_s30 = smov 96   ;;  %vm3116_vm3 = vcmask 261120  }
   0xe   :  { %3760 = vmatprep.subr.mxu1 %v50_v7  ;;  %v38_v13 = vld [vmem:[%s4967_s2 + $0x50] sm:$0xff]  ;;  %v37_v16 = vld [vmem:[%s4967_s2 + $0x40] sm:$0xff]  ;;  %v26_v21 = vld [vmem:[%s4966_s1 + $0x8] sm:$0xff]  ;;  %s4220_s6 = smov 32   ;;  %s4221_s7 = smov 80   ;;  %vm3121_vm4 = vcmask 392192  }
   0xf   :  { %3761 = vmatpush3.msra.mxu1 %v50_v7  ;;  %v36_v17 = vld [vmem:[%s4967_s2 + $0x30] sm:$0xff]  ;;  %v35_v18 = vld [vmem:[%s4967_s2 + $0x20] sm:$0xff]  ;;  %v28_v23 = vld [vmem:[%s4966_s1 + $0x18] sm:$0xff]  ;;  %s4222_s8 = smov 16  }
  0x10   :  { %3762 = vmatprep.subr.mxu1 %v49_v8  ;;  %v34_v19 = vld [vmem:[%s4967_s2 + $0x10] sm:$0xff]  ;;  %v33_v20 = vld [vmem:[%s4967_s2] sm:$0xff]  ;;  %v30_v25 = vld [vmem:[%s4966_s1 + $0x28] sm:$0xff] }
  0x11   :  { %3763 = vmatpush3.msra.mxu1 %v49_v8  ;;  %v27_v22 = vld [vmem:[%s4966_s1 + $0x10] sm:$0xff]  ;;  %v29_v24 = vld [vmem:[%s4966_s1 + $0x20] sm:$0xff]  ;;  %v32_v27 = vld [vmem:[%s4966_s1 + $0x38] sm:$0xff] }
  0x12   :  { %3765 = vmatmul.mubr.msk.f32.vlgmr.msra.gmra.mxu1 %vm92_vm0, %v22_v9  ;;  %3770 = vmatprep.subr.mxu1 %v40_v10  ;;  %v31_v26 = vld [vmem:[%s4966_s1 + $0x30] sm:$0xff]  ;;  %v3494_v33 = vld [vmem:[%s4969_s4 + $0x1] ss:$0 sm:$0xff]  ;;  %v3489_v39 = vld [vmem:[%s4969_s4] ss:$0 sm:$0xff] }
  0x13   :  { %3771 = vmatpush3.msra.mxu1 %v40_v10  ;;  %3767 = vmatprep.mubr.msk.f32.mxu1 %vm92_vm0, %v23_v11 }
  0x14   :  { %3772 = vmatprep.subr.mxu1 %v39_v12 }
  0x15   :  { %3773 = vmatpush3.msra.mxu1 %v39_v12 }
  0x16   :  { %3774 = vmatprep.subr.mxu1 %v38_v13  ;;  %3768 = vmatmul.mubr.msk.f32.gmra.mxu1 %vm92_vm0, %v24_v14 }
  0x17   :  { %3775 = vmatpush3.msra.mxu1 %v38_v13  ;;  %3786 = vmatprep.mubr.msk.f32.mxu1 %vm92_vm0, %v25_v15 }
  0x18   :  { %3776 = vmatprep.subr.mxu1 %v37_v16 }
  0x19   :  { %3777 = vmatpush3.msra.mxu1 %v37_v16 }
  0x1a   :  { %3778 = vmatprep.subr.mxu1 %v36_v17 }
  0x1b   :  { %3779 = vmatpush3.msra.mxu1 %v36_v17 }
  0x1c   :  { %3780 = vmatprep.subr.mxu1 %v35_v18 }
  0x1d   :  { %3781 = vmatpush3.msra.mxu1 %v35_v18 }
  0x1e   :  { %3782 = vmatprep.subr.mxu1 %v34_v19 }
  0x1f   :  { %3783 = vmatpush3.msra.mxu1 %v34_v19 }
  0x20   :  { %3784 = vmatprep.subr.mxu1 %v33_v20 }
  0x21   :  { %3785 = vmatpush3.msra.mxu1 %v33_v20 }
  0x22   :  { %3787 = vmatmul.mubr.msk.f32.vlgmr.msra.gmra.mxu1 %vm92_vm0, %v26_v21  ;;  %3812 = vmatprep.subr.mxu1 %v4214_v28 }
  0x23   :  { %3789 = vmatprep.mubr.msk.f32.mxu1 %vm92_vm0, %v27_v22 }
  0x26   :  { %3790 = vmatmul.mubr.msk.f32.gmra.mxu1 %vm92_vm0, %v28_v23 }
  0x27   :  { %3792 = vmatprep.mubr.msk.f32.mxu1 %vm92_vm0, %v29_v24 }
  0x2a   :  { %3793 = vmatmul.mubr.msk.f32.gmra.mxu1 %vm92_vm0, %v30_v25 }
  0x2b   :  { %3795 = vmatprep.mubr.msk.f32.mxu1 %vm92_vm0, %v31_v26 }
  0x2e   :  { %3796 = vmatmul.mubr.msk.f32.gmra.mxu1 %vm92_vm0, %v32_v27 }
  0x2f   :  { %3816 = vmatprep.mubr.msk.f32.mxu1 %vm4215_vm1, %v4214_v28 }
  0xd2   :  { %v3766_v29 = vpop.f32.mrf.mxu1 }
  0xd3   :  { %v4410_v51 = vadd.f32 %v3766_v29, %v3489_v39 }
  0xd4   :  { %v171_v30 = vpop.f32.mrf.mxu1 }
  0xd5   :  { %v4379_v42 = vadd.f32 %v3489_v39, %v171_v30 }
  0xd6   :  { %v3769_v31 = vpop.f32.mrf.mxu1 }
  0xd7   :  { %v4437_v54 = vadd.f32 %v3769_v31, %v3489_v39 }
  0xd8   :  { %v181_v32 = vpop.f32.mrf.mxu1 }
  0xd9   :  { %v4412_v52 = vadd.f32 %v3489_v39, %v181_v32 }
  0xe2   :  { %v3788_v34 = vpop.f32.mrf.mxu1 }
  0xe3   :  { %v4361_v35 = vadd.f32 %v3788_v34, %v3494_v33 }
  0xe4   :  { %v284_v36 = vpop.f32.mrf.mxu1 }
  0xe5   :  { %v4363_v37 = vadd.f32 %v3494_v33, %v284_v36  ;;  %686 = vrot.lane.b32.xlu0 %v4361_v35, %s4216_s25  ;;  %3799 = vmatpush3.xpose.msk.msra.mxu0 %vm323_vm2, %v4361_v35 }
  0xe6   :  { %v3791_v38 = vpop.f32.mrf.mxu1  ;;  %3800 = vmatprep.subr.mxu0 %v4214_v28 }
  0xe7   :  { %v4373_v40 = vadd.f32 %v3791_v38, %v3494_v33  ;;  %684 = vrot.lane.b32.xlu1 %v4363_v37, %s4216_s25 }
  0xe8   :  { %v294_v41 = vpop.f32.mrf.mxu1 }
  0xe9   :  { %3801 = vmatpush3.xpose.msk.msra.mxu0 %vm323_vm2, %v4363_v37  ;;  %v4388_v46 = vadd.f32 %v3494_v33, %v294_v41 }
  0xea   :  { %v3794_v43 = vpop.f32.mrf.mxu1  ;;  %3805 = vmatprep.subr.mxu0 %v4214_v28 }
  0xeb   :  { %v4382_v44 = vadd.f32 %v3794_v43, %v3494_v33  ;;  %765 = vrot.lane.b32.xlu1 %v4373_v40, %s4216_s25 }
  0xec   :  { %3803 = vmatmul.mubr.msk.f32.vlgmr.msra.gmra.mxu0 %vm323_vm2, %v4379_v42  ;;  %v304_v45 = vpop.f32.mrf.mxu1 }
  0xed   :  { %3806 = vmatpush3.xpose.msk.msra.mxu0 %vm323_vm2, %v4373_v40  ;;  %3813 = vmatpush3.xpose.msk.msra.mxu1 %vm323_vm2, %v4382_v44  ;;  %v4394_v47 = vadd.f32 %v3494_v33, %v304_v45 }
  0xee   :  { %v3797_v48 = vpop.f32.mrf.mxu1  ;;  %3807 = vmatprep.subr.mxu0 %v4214_v28  ;;  %3814 = vmatprep.subr.mxu1 %v4214_v28 }
  0xef   :  { %763 = vrot.lane.b32.xlu1 %v4388_v46, %s4216_s25  ;;  %v4400_v49 = vadd.f32 %v3797_v48, %v3494_v33  ;;  %3809 = vmatprep.mubr.msk.f32.mxu0 %vm4215_vm1, %v4214_v28 }
  0xf0   :  { %v314_v50 = vpop.f32.mrf.mxu1  ;;  %844 = vrot.lane.b32.xlu0 %v4382_v44, %s4216_s25 }
  0xf1   :  { %3808 = vmatpush3.xpose.msk.msra.mxu0 %vm323_vm2, %v4388_v46  ;;  %3815 = vmatpush3.xpose.msk.msra.mxu1 %vm323_vm2, %v4394_v47  ;;  %v4418_v53 = vadd.f32 %v3494_v33, %v314_v50 }
  0xf2   :  { %3819 = vmatprep.subr.mxu0 %v4214_v28  ;;  %3826 = vmatprep.subr.mxu1 %v4214_v28 }
  0xf3   :  { %923 = vrot.lane.b32.xlu1 %v4400_v49, %s4216_s25 }
  0xf4   :  { %3810 = vmatmul.mubr.msk.f32.vlgmr.msra.gmra.mxu0 %vm323_vm2, %v4410_v51  ;;  %3817 = vmatmul.mubr.msk.f32.vlgmr.msra.gmra.mxu1 %vm323_vm2, %v4412_v52 }
  0xf5   :  { %3820 = vmatpush3.xpose.msk.msra.mxu0 %vm323_vm2, %v4400_v49  ;;  %3823 = vmatprep.mubr.msk.f32.mxu0 %vm4215_vm1, %v4214_v28 }
  0xf6   :  { %3821 = vmatprep.subr.mxu0 %v4214_v28  ;;  %842 = vrot.lane.b32.xlu0 %v4394_v47, %s4216_s25 }
  0xf7   :  { %921 = vrot.lane.b32.xlu1 %v4418_v53, %s4216_s25  ;;  %3830 = vmatprep.mubr.msk.f32.mxu1 %vm4215_vm1, %v4214_v28 }
  0xf9   :  { %3822 = vmatpush3.xpose.msk.msra.mxu0 %vm323_vm2, %v4418_v53 }
  0xfa   :  { %3840 = vmatprep.subr.mxu0 %v4214_v28 }
  0xfb   :  { %1086 = vrot.lane.b32.xlu1 %v4373_v40, %s4217_s28 }
  0xfc   :  { %3824 = vmatmul.mubr.msk.f32.vlgmr.msra.gmra.mxu0 %vm323_vm2, %v4437_v54 }
  0xfd   :  { %3844 = vmatprep.mubr.msk.f32.mxu0 %vm4215_vm1, %v4214_v28 }
 0x157   :  { %v687_v55 = vpop.permute.xlu0 %686 }
 0x158   :  { %3827 = vmatpush3.msra.mxu1 %v687_v55 }
 0x159   :  { %v685_v56 = vpop.permute.xlu1 %684  ;;  %3828 = vmatprep.subr.mxu1 %v4214_v28 }
 0x15a   :  { %3829 = vmatpush3.msra.mxu1 %v685_v56 }
 0x15b   :  { %3833 = vmatprep.subr.mxu1 %v4214_v28 }
 0x15d   :  { %v766_v13 = vpop.permute.xlu1 %765 }
 0x161   :  { %v764_v16 = vpop.permute.xlu1 %763 }
 0x162   :  { %v845_v57 = vpop.permute.xlu0 %844 }
 0x163   :  { %3841 = vmatpush3.msra.mxu0 %v845_v57 }
 0x164   :  { %3842 = vmatprep.subr.mxu0 %v4214_v28 }
 0x165   :  { %v924_v19 = vpop.permute.xlu1 %923 }
 0x168   :  { %v843_v58 = vpop.permute.xlu0 %842 }
 0x169   :  { %3843 = vmatpush3.msra.mxu0 %v843_v58  ;;  %v922_v20 = vpop.permute.xlu1 %921 }
 0x16a   :  { %3854 = vmatprep.subr.mxu0 %v4214_v28 }
 0x16d   :  { %v4460_v21 = vpop.permute.xlu1 %1086 }
 0x1ac   :  { %v399_v59 = vpop.f32.mrf.mxu0 }
 0x1ad   :  { %v640_v60 = vsel %vm323_vm2, %v399_v59, -inf }
 0x1ae   :  { %641 = vmax.xlane.f32.xlu0 %v640_v60  ;;  %v3804_v61 = vpop.f32.mrf.mxu0 }
 0x1b4   :  { %v478_v62 = vpop.f32.mrf.mxu0  ;;  %v557_v63 = vpop.f32.mrf.mxu1 }
 0x1b5   :  { %v646_v0 = vsel %vm323_vm2, %v557_v63, -inf  ;;  %v643_v1 = vsel %vm323_vm2, %v478_v62, -inf }
 0x1b6   :  { %647 = vmax.xlane.f32.xlu1 %v646_v0  ;;  %v3818_v2 = vpop.f32.mrf.mxu1  ;;  %644 = vmax.xlane.f32.xlu0 %v643_v1  ;;  %v3811_v3 = vpop.f32.mrf.mxu0 }
 0x1bc   :  { %v636_v4 = vpop.f32.mrf.mxu0 }
 0x1bd   :  { %v649_v5 = vsel %vm323_vm2, %v636_v4, -inf }
 0x1be   :  { %650 = vmax.xlane.f32.xlu1 %v649_v5  ;;  %v3825_v6 = vpop.f32.mrf.mxu0 }
 0x1cc   :  { %1004 = vrot.lane.b32.xlu0 %v4361_v35, %s4217_s28 }
 0x1cf   :  { %1084 = vrot.lane.b32.xlu1 %v4388_v46, %s4217_s28 }
 0x237   :  { %v642_v7 = vpop.xlane.xlu0 %641 }
 0x238   :  { %v652_v8 = vsub.f32 %v399_v59, %v642_v7 }
 0x23a   :  { %v656_v9 = vmul.f32 1.442695, %v652_v8 }
 0x23c   :  { %4116 = vpow2.f32 %v656_v9 }
 0x23f   :  { %v645_v10 = vpop.xlane.xlu0 %644  ;;  %v648_v22 = vpop.xlane.xlu1 %647 }
 0x240   :  { %v653_v11 = vsub.f32 %v478_v62, %v645_v10  ;;  %v654_v23 = vsub.f32 %v557_v63, %v648_v22 }
 0x242   :  { %v658_v12 = vmul.f32 1.442695, %v653_v11  ;;  %v660_v24 = vmul.f32 1.442695, %v654_v23 }
 0x243   :  { %v1005_v33 = vpop.permute.xlu0 %1004 }
 0x244   :  { %4118 = vpow2.f32 %v658_v12 }
 0x245   :  { %4120 = vpow2.f32 %v660_v24 }
 0x247   :  { %v651_v25 = vpop.xlane.xlu1 %650 }
 0x248   :  { %v655_v26 = vsub.f32 %v636_v4, %v651_v25 }
 0x249   :  { %v4117_v14 = vpop.eup %4116 }
 0x24a   :  { %v664_v15 = vsel %vm323_vm2, %v4117_v14, 0.0  ;;  %v662_v27 = vmul.f32 1.442695, %v655_v26 }
 0x24b   :  { %665 = vadd.xlane.f32.xlu0 %v664_v15  ;;  %v1085_v36 = vpop.permute.xlu1 %1084 }
 0x24c   :  { %4122 = vpow2.f32 %v662_v27 }
 0x251   :  { %v4119_v17 = vpop.eup %4118 }
 0x252   :  { %v667_v18 = vsel %vm323_vm2, %v4119_v17, 0.0  ;;  %v4121_v29 = vpop.eup %4120 }
 0x253   :  { %668 = vadd.xlane.f32.xlu1 %v667_v18  ;;  %v670_v30 = vsel %vm323_vm2, %v4121_v29, 0.0 }
 0x259   :  { %v4123_v31 = vpop.eup %4122 }
 0x25a   :  { %v673_v32 = vsel %vm323_vm2, %v4123_v31, 0.0 }
 0x261   :  { %1002 = vrot.lane.b32.xlu0 %v4363_v37, %s4217_s28 }
 0x264   :  { %1168 = vrot.lane.b32.xlu1 %v4382_v44, %s4217_s28 }
 0x280   :  { %671 = vadd.xlane.f32.xlu0 %v670_v30 }
 0x288   :  { %674 = vadd.xlane.f32.xlu1 %v673_v32 }
 0x296   :  { %1000 = vrot.lane.b32.xlu0 %v4379_v42, %s4217_s28 }
 0x299   :  { %1250 = vrot.lane.b32.xlu1 %v4400_v49, %s4217_s28 }
 0x29a   :  { %1082 = vrot.lane.b32.xlu0 %v4410_v51, %s4217_s28 }
 0x29d   :  { %1248 = vrot.lane.b32.xlu1 %v4418_v53, %s4217_s28 }
 0x29e   :  { %1166 = vrot.lane.b32.xlu0 %v4394_v47, %s4217_s28 }
 0x2a1   :  { %1246 = vrot.lane.b32.xlu1 %v4437_v54, %s4217_s28 }
 0x2a2   :  { %1164 = vrot.lane.b32.xlu0 %v4412_v52, %s4217_s28 }
 0x2d4   :  { %v666_v34 = vpop.xlane.xlu0 %665 }
 0x2d5   :  { %4124 = vrcp.f32 %v666_v34 }
 0x2d8   :  { %v1003_v48 = vpop.permute.xlu0 %1002 }
 0x2dc   :  { %v669_v38 = vpop.xlane.xlu1 %668 }
 0x2dd   :  { %4126 = vrcp.f32 %v669_v38 }
 0x2e0   :  { %v1169_v55 = vpop.permute.xlu1 %1168 }
 0x2e2   :  { %v4125_v39 = vpop.eup %4124 }
 0x2e3   :  { %v680_v41 = vmul.f32 %v4125_v39, %v4117_v14 }
 0x2e5   :  { %3831 = vmatmul.mubr.msk.f32.vlgmr.msra.gmra.mxu1 %vm323_vm2, %v680_v41 }
 0x2e6   :  { %3834 = vmatpush3.msra.mxu1 %v766_v13  ;;  %3837 = vmatprep.mubr.msk.f32.mxu1 %vm4215_vm1, %v4214_v28 }
 0x2e7   :  { %3835 = vmatprep.subr.mxu1 %v4214_v28 }
 0x2e8   :  { %3836 = vmatpush3.msra.mxu1 %v764_v16 }
 0x2e9   :  { %3847 = vmatprep.subr.mxu1 %v4214_v28 }
 0x2ea   :  { %v4127_v43 = vpop.eup %4126 }
 0x2eb   :  { %v681_v45 = vmul.f32 %v4127_v43, %v4119_v17 }
 0x2ed   :  { %3838 = vmatmul.mubr.msk.f32.vlgmr.msra.gmra.mxu1 %vm323_vm2, %v681_v45 }
 0x2ee   :  { %3848 = vmatpush3.msra.mxu1 %v924_v19  ;;  %3851 = vmatprep.mubr.msk.f32.mxu1 %vm4215_vm1, %v4214_v28 }
 0x2ef   :  { %3849 = vmatprep.subr.mxu1 %v4214_v28 }
 0x2f0   :  { %3850 = vmatpush3.msra.mxu1 %v922_v20 }
 0x2f1   :  { %3861 = vmatprep.subr.mxu1 %v4214_v28 }
 0x309   :  { %v672_v50 = vpop.xlane.xlu0 %671 }
 0x30a   :  { %4128 = vrcp.f32 %v672_v50 }
 0x30d   :  { %v1001_v58 = vpop.permute.xlu0 %1000 }
 0x311   :  { %v675_v56 = vpop.xlane.xlu1 %674  ;;  %v1083_v60 = vpop.permute.xlu0 %1082 }
 0x312   :  { %4130 = vrcp.f32 %v675_v56 }
 0x315   :  { %v1167_v63 = vpop.permute.xlu0 %1166  ;;  %v1251_v0 = vpop.permute.xlu1 %1250 }
 0x317   :  { %v4129_v57 = vpop.eup %4128 }
 0x318   :  { %v682_v59 = vmul.f32 %v4129_v57, %v4121_v29 }
 0x319   :  { %v1165_v1 = vpop.permute.xlu0 %1164  ;;  %v1249_v2 = vpop.permute.xlu1 %1248 }
 0x31a   :  { %3845 = vmatmul.mubr.msk.f32.vlgmr.msra.gmra.mxu0 %vm323_vm2, %v682_v59 }
 0x31b   :  { %3855 = vmatpush3.xpose.msk.msra.mxu0 %vm323_vm2, %v1005_v33  ;;  %3858 = vmatprep.mubr.msk.f32.mxu0 %vm4215_vm1, %v4214_v28 }
 0x31c   :  { %3856 = vmatprep.subr.mxu0 %v4214_v28 }
 0x31d   :  { %v1247_v3 = vpop.permute.xlu1 %1246 }
 0x31f   :  { %3857 = vmatpush3.xpose.msk.msra.mxu0 %vm323_vm2, %v1003_v48  ;;  %v4131_v61 = vpop.eup %4130 }
 0x320   :  { %3868 = vmatprep.subr.mxu0 %v4214_v28  ;;  %v683_v62 = vmul.f32 %v4131_v61, %v4123_v31 }
 0x322   :  { %3859 = vmatmul.mubr.msk.f32.vlgmr.msra.gmra.mxu0 %vm323_vm2, %v1001_v58  ;;  %3852 = vmatmul.mubr.msk.f32.vlgmr.msra.gmra.mxu1 %vm323_vm2, %v683_v62 }
 0x323   :  { %3869 = vmatpush3.xpose.msk.msra.mxu0 %vm323_vm2, %v1169_v55  ;;  %3862 = vmatpush3.xpose.msk.msra.mxu1 %vm323_vm2, %v4460_v21 }
 0x324   :  { %3870 = vmatprep.subr.mxu0 %v4214_v28  ;;  %3863 = vmatprep.subr.mxu1 %v4214_v28 }
 0x325   :  { %3865 = vmatprep.mubr.msk.f32.mxu1 %vm4215_vm1, %v4214_v28  ;;  %3872 = vmatprep.mubr.msk.f32.mxu0 %vm4215_vm1, %v4214_v28 }
 0x327   :  { %3871 = vmatpush3.xpose.msk.msra.mxu0 %vm323_vm2, %v1167_v63  ;;  %3864 = vmatpush3.xpose.msk.msra.mxu1 %vm323_vm2, %v1085_v36 }
 0x328   :  { %3882 = vmatprep.subr.mxu0 %v4214_v28  ;;  %3875 = vmatprep.subr.mxu1 %v4214_v28 }
 0x32a   :  { %3873 = vmatmul.mubr.msk.f32.vlgmr.msra.gmra.mxu0 %vm323_vm2, %v1165_v1  ;;  %3866 = vmatmul.mubr.msk.f32.vlgmr.msra.gmra.mxu1 %vm323_vm2, %v1083_v60 }
 0x32b   :  { %3886 = vmatprep.mubr.msk.f32.mxu0 %vm4215_vm1, %v4214_v28  ;;  %3876 = vmatpush3.xpose.msk.msra.mxu1 %vm323_vm2, %v1251_v0 }
 0x32c   :  { %3879 = vmatprep.mubr.msk.f32.mxu1 %vm4215_vm1, %v4214_v28  ;;  %3877 = vmatprep.subr.mxu1 %v4214_v28 }
 0x32f   :  { %3878 = vmatpush3.xpose.msk.msra.mxu1 %vm323_vm2, %v1249_v2 }
 0x330   :  { %3889 = vmatprep.subr.mxu1 %v4214_v28 }
 0x332   :  { %3880 = vmatmul.mubr.msk.f32.vlgmr.msra.gmra.mxu1 %vm323_vm2, %v1247_v3 }
 0x333   :  { %3893 = vmatprep.mubr.msk.f32.mxu1 %vm4215_vm1, %v4214_v28 }
 0x3a5   :  { %v4527_v4 = vpop.f32.mrf.mxu1 }
 0x3a7   :  { %v3832_v5 = vpop.f32.mrf.mxu1 }
 0x3ad   :  { %v4529_v6 = vpop.f32.mrf.mxu1 }
 0x3af   :  { %v3839_v7 = vpop.f32.mrf.mxu1 }
 0x3da   :  { %v4531_v8 = vpop.f32.mrf.mxu0 }
 0x3dc   :  { %v3846_v9 = vpop.f32.mrf.mxu0 }
 0x3e2   :  { %v1078_v10 = vpop.f32.mrf.mxu0  ;;  %v4533_v11 = vpop.f32.mrf.mxu1 }
 0x3e3   :  { %v1328_v12 = vsel %vm323_vm2, %v1078_v10, -inf }
 0x3e4   :  { %1329 = vmax.xlane.f32.xlu0 %v1328_v12  ;;  %v3860_v13 = vpop.f32.mrf.mxu0  ;;  %v3853_v14 = vpop.f32.mrf.mxu1 }
 0x3ea   :  { %v1242_v15 = vpop.f32.mrf.mxu0  ;;  %v1160_v16 = vpop.f32.mrf.mxu1 }
 0x3eb   :  { %v1334_v17 = vsel %vm323_vm2, %v1242_v15, -inf  ;;  %v1331_v18 = vsel %vm323_vm2, %v1160_v16, -inf }
 0x3ec   :  { %1335 = vmax.xlane.f32.xlu0 %v1334_v17  ;;  %v3874_v19 = vpop.f32.mrf.mxu0  ;;  %1332 = vmax.xlane.f32.xlu1 %v1331_v18  ;;  %v3867_v20 = vpop.f32.mrf.mxu1 }
 0x3f2   :  { %v1324_v21 = vpop.f32.mrf.mxu1 }
 0x3f3   :  { %v1337_v22 = vsel %vm323_vm2, %v1324_v21, -inf }
 0x3f4   :  { %v3881_v23 = vpop.f32.mrf.mxu1  ;;  %1338 = vmax.xlane.f32.xlu0 %v1337_v22 }
 0x3fd   :  { %1453 = vrot.lane.b32.xlu1 %v4373_v40, %s4218_s29 }
 0x401   :  { %1372 = vrot.lane.b32.xlu1 %v4363_v37, %s4218_s29 }
 0x405   :  { %1451 = vrot.lane.b32.xlu1 %v4388_v46, %s4218_s29 }
 0x409   :  { %1611 = vrot.lane.b32.xlu1 %v4400_v49, %s4218_s29 }
 0x40a   :  { %1374 = vrot.lane.b32.xlu0 %v4361_v35, %s4218_s29 }
 0x40d   :  { %1609 = vrot.lane.b32.xlu1 %v4418_v53, %s4218_s29 }
 0x40e   :  { %1532 = vrot.lane.b32.xlu0 %v4382_v44, %s4218_s29 }
 0x411   :  { %1774 = vrot.lane.b32.xlu1 %v4373_v40, %s4219_s30 }
 0x412   :  { %1530 = vrot.lane.b32.xlu0 %v4394_v47, %s4218_s29 }
 0x415   :  { %1772 = vrot.lane.b32.xlu1 %v4388_v46, %s4219_s30 }
 0x416   :  { %1692 = vrot.lane.b32.xlu0 %v4361_v35, %s4219_s30 }
 0x41a   :  { %1690 = vrot.lane.b32.xlu0 %v4363_v37, %s4219_s30 }
 0x46d   :  { %v1330_v24 = vpop.xlane.xlu0 %1329 }
 0x46e   :  { %v1340_v25 = vsub.f32 %v1078_v10, %v1330_v24 }
 0x470   :  { %v1344_v26 = vmul.f32 1.442695, %v1340_v25 }
 0x472   :  { %4132 = vpow2.f32 %v1344_v26 }
 0x475   :  { %v1336_v27 = vpop.xlane.xlu0 %1335  ;;  %v1333_v29 = vpop.xlane.xlu1 %1332 }
 0x476   :  { %v1342_v30 = vsub.f32 %v1242_v15, %v1336_v27  ;;  %v1341_v31 = vsub.f32 %v1160_v16, %v1333_v29 }
 0x478   :  { %v1348_v32 = vmul.f32 1.442695, %v1342_v30  ;;  %v1346_v33 = vmul.f32 1.442695, %v1341_v31 }
 0x479   :  { %v1454_v34 = vpop.permute.xlu1 %1453 }
 0x47a   :  { %4134 = vpow2.f32 %v1348_v32  ;;  %3890 = vmatpush3.msra.mxu1 %v1454_v34 }
 0x47b   :  { %4136 = vpow2.f32 %v1346_v33  ;;  %3891 = vmatprep.subr.mxu1 %v4214_v28 }
 0x47d   :  { %v1373_v36 = vpop.permute.xlu1 %1372  ;;  %v1339_v38 = vpop.xlane.xlu0 %1338 }
 0x47e   :  { %v1343_v57 = vsub.f32 %v1324_v21, %v1339_v38 }
 0x47f   :  { %v4133_v39 = vpop.eup %4132 }
 0x480   :  { %v1352_v41 = vsel %vm323_vm2, %v4133_v39, 0.0  ;;  %v1350_v58 = vmul.f32 1.442695, %v1343_v57 }
 0x481   :  { %1353 = vadd.xlane.f32.xlu0 %v1352_v41  ;;  %v1452_v43 = vpop.permute.xlu1 %1451  ;;  %v1375_v45 = vpop.permute.xlu0 %1374 }
 0x482   :  { %3883 = vmatpush3.msra.mxu0 %v1375_v45  ;;  %3892 = vmatpush3.msra.mxu1 %v1452_v43  ;;  %4138 = vpow2.f32 %v1350_v58 }
 0x483   :  { %3884 = vmatprep.subr.mxu0 %v4214_v28  ;;  %3903 = vmatprep.subr.mxu1 %v4214_v28 }
 0x484   :  { %3885 = vmatpush3.msra.mxu0 %v1373_v36 }
 0x485   :  { %3896 = vmatprep.subr.mxu0 %v4214_v28  ;;  %v1533_v61 = vpop.permute.xlu0 %1532  ;;  %v1612_v63 = vpop.permute.xlu1 %1611 }
 0x487   :  { %v4135_v48 = vpop.eup %4134 }
 0x488   :  { %v4137_v50 = vpop.eup %4136  ;;  %v1358_v55 = vsel %vm323_vm2, %v4135_v48, 0.0 }
 0x489   :  { %v1355_v56 = vsel %vm323_vm2, %v4137_v50, 0.0  ;;  %1359 = vadd.xlane.f32.xlu0 %v1358_v55  ;;  %v1531_v62 = vpop.permute.xlu0 %1530  ;;  %v1610_v1 = vpop.permute.xlu1 %1609 }
 0x48a   :  { %1356 = vadd.xlane.f32.xlu1 %v1355_v56 }
 0x48d   :  { %v1693_v0 = vpop.permute.xlu0 %1692  ;;  %v1775_v3 = vpop.permute.xlu1 %1774 }
 0x48f   :  { %v4139_v59 = vpop.eup %4138 }
 0x490   :  { %v1361_v60 = vsel %vm323_vm2, %v4139_v59, 0.0 }
 0x491   :  { %v1691_v2 = vpop.permute.xlu0 %1690  ;;  %v1773_v7 = vpop.permute.xlu1 %1772 }
 0x49b   :  { %1856 = vrot.lane.b32.xlu1 %v4382_v44, %s4219_s30 }
 0x49f   :  { %1688 = vrot.lane.b32.xlu0 %v4379_v42, %s4219_s30 }
 0x4a3   :  { %1770 = vrot.lane.b32.xlu0 %v4410_v51, %s4219_s30 }
 0x4a7   :  { %1854 = vrot.lane.b32.xlu0 %v4394_v47, %s4219_s30 }
 0x4ab   :  { %1852 = vrot.lane.b32.xlu0 %v4412_v52, %s4219_s30 }
 0x4bf   :  { %1362 = vadd.xlane.f32.xlu1 %v1361_v60 }
 0x4d0   :  { %1938 = vrot.lane.b32.xlu1 %v4400_v49, %s4219_s30 }
 0x4d4   :  { %1936 = vrot.lane.b32.xlu1 %v4418_v53, %s4219_s30 }
 0x4d8   :  { %1934 = vrot.lane.b32.xlu1 %v4437_v54, %s4219_s30 }
 0x50a   :  { %v1354_v5 = vpop.xlane.xlu0 %1353 }
 0x50b   :  { %4140 = vrcp.f32 %v1354_v5 }
 0x512   :  { %v1360_v9 = vpop.xlane.xlu0 %1359 }
 0x513   :  { %v1357_v10 = vpop.xlane.xlu1 %1356  ;;  %4142 = vrcp.f32 %v1360_v9 }
 0x514   :  { %4144 = vrcp.f32 %v1357_v10 }
 0x516   :  { %v1689_v15 = vpop.permute.xlu0 %1688 }
 0x517   :  { %v1857_v20 = vpop.permute.xlu1 %1856 }
 0x518   :  { %v4141_v12 = vpop.eup %4140 }
 0x519   :  { %v1368_v13 = vmul.f32 %v4141_v12, %v4133_v39 }
 0x51a   :  { %v1771_v19 = vpop.permute.xlu0 %1770 }
 0x51b   :  { %3887 = vmatmul.mubr.msk.f32.vlgmr.msra.gmra.mxu0 %vm323_vm2, %v1368_v13 }
 0x51c   :  { %3897 = vmatpush3.msra.mxu0 %v1533_v61  ;;  %3900 = vmatprep.mubr.msk.f32.mxu0 %vm4215_vm1, %v4214_v28 }
 0x51d   :  { %3898 = vmatprep.subr.mxu0 %v4214_v28 }
 0x51e   :  { %3899 = vmatpush3.msra.mxu0 %v1531_v62  ;;  %v1855_v21 = vpop.permute.xlu0 %1854 }
 0x51f   :  { %3910 = vmatprep.subr.mxu0 %v4214_v28 }
 0x520   :  { %v4143_v14 = vpop.eup %4142 }
 0x521   :  { %v4145_v16 = vpop.eup %4144  ;;  %v1370_v17 = vmul.f32 %v4143_v14, %v4135_v48 }
 0x522   :  { %v1369_v18 = vmul.f32 %v4145_v16, %v4137_v50  ;;  %v1853_v22 = vpop.permute.xlu0 %1852 }
 0x523   :  { %3901 = vmatmul.mubr.msk.f32.vlgmr.msra.gmra.mxu0 %vm323_vm2, %v1370_v17 }
 0x524   :  { %3894 = vmatmul.mubr.msk.f32.vlgmr.msra.gmra.mxu1 %vm323_vm2, %v1369_v18  ;;  %3911 = vmatpush3.xpose.msk.msra.mxu0 %vm323_vm2, %v1693_v0 }
 0x525   :  { %3904 = vmatpush3.msra.mxu1 %v1612_v63  ;;  %3912 = vmatprep.subr.mxu0 %v4214_v28 }
 0x526   :  { %3905 = vmatprep.subr.mxu1 %v4214_v28  ;;  %3914 = vmatprep.mubr.msk.f32.mxu0 %vm4215_vm1, %v4214_v28 }
 0x527   :  { %3906 = vmatpush3.msra.mxu1 %v1610_v1  ;;  %3907 = vmatprep.mubr.msk.f32.mxu1 %vm4215_vm1, %v4214_v28 }
 0x528   :  { %3913 = vmatpush3.xpose.msk.msra.mxu0 %vm323_vm2, %v1691_v2  ;;  %3917 = vmatprep.subr.mxu1 %v4214_v28 }
 0x529   :  { %3924 = vmatprep.subr.mxu0 %v4214_v28 }
 0x52b   :  { %3915 = vmatmul.mubr.msk.f32.vlgmr.msra.gmra.mxu0 %vm323_vm2, %v1689_v15 }
 0x52c   :  { %3925 = vmatpush3.xpose.msk.msra.mxu0 %vm323_vm2, %v1857_v20  ;;  %3928 = vmatprep.mubr.msk.f32.mxu0 %vm4215_vm1, %v4214_v28 }
 0x52d   :  { %3926 = vmatprep.subr.mxu0 %v4214_v28 }
 0x530   :  { %3927 = vmatpush3.xpose.msk.msra.mxu0 %vm323_vm2, %v1855_v21 }
 0x531   :  { %3938 = vmatprep.subr.mxu0 %v4214_v28 }
 0x533   :  { %3929 = vmatmul.mubr.msk.f32.vlgmr.msra.gmra.mxu0 %vm323_vm2, %v1853_v22 }
 0x534   :  { %3942 = vmatprep.mubr.msk.f32.mxu0 %vm4215_vm1, %v4214_v28 }
 0x548   :  { %v1363_v23 = vpop.xlane.xlu1 %1362 }
 0x549   :  { %4146 = vrcp.f32 %v1363_v23 }
 0x54c   :  { %v1939_v26 = vpop.permute.xlu1 %1938 }
 0x550   :  { %v1937_v27 = vpop.permute.xlu1 %1936 }
 0x554   :  { %v1935_v29 = vpop.permute.xlu1 %1934 }
 0x556   :  { %v4147_v24 = vpop.eup %4146 }
 0x557   :  { %v1371_v25 = vmul.f32 %v4147_v24, %v4139_v59 }
 0x559   :  { %3908 = vmatmul.mubr.msk.f32.vlgmr.msra.gmra.mxu1 %vm323_vm2, %v1371_v25 }
 0x55a   :  { %3918 = vmatpush3.xpose.msk.msra.mxu1 %vm323_vm2, %v1775_v3  ;;  %3921 = vmatprep.mubr.msk.f32.mxu1 %vm4215_vm1, %v4214_v28 }
 0x55b   :  { %3919 = vmatprep.subr.mxu1 %v4214_v28 }
 0x55e   :  { %3920 = vmatpush3.xpose.msk.msra.mxu1 %vm323_vm2, %v1773_v7 }
 0x55f   :  { %3931 = vmatprep.subr.mxu1 %v4214_v28 }
 0x561   :  { %3922 = vmatmul.mubr.msk.f32.vlgmr.msra.gmra.mxu1 %vm323_vm2, %v1771_v19 }
 0x562   :  { %3932 = vmatpush3.xpose.msk.msra.mxu1 %vm323_vm2, %v1939_v26  ;;  %3935 = vmatprep.mubr.msk.f32.mxu1 %vm4215_vm1, %v4214_v28 }
 0x563   :  { %3933 = vmatprep.subr.mxu1 %v4214_v28 }
 0x566   :  { %3934 = vmatpush3.xpose.msk.msra.mxu1 %vm323_vm2, %v1937_v27 }
 0x567   :  { %3945 = vmatprep.subr.mxu1 %v4214_v28 }
 0x569   :  { %3936 = vmatmul.mubr.msk.f32.vlgmr.msra.gmra.mxu1 %vm323_vm2, %v1935_v29 }
 0x56a   :  { %3949 = vmatprep.mubr.msk.f32.mxu1 %vm4215_vm1, %v4214_v28 }
 0x5db   :  { %v4631_v30 = vpop.f32.mrf.mxu0 }
 0x5dd   :  { %v3888_v31 = vpop.f32.mrf.mxu0 }
 0x5e3   :  { %v4633_v32 = vpop.f32.mrf.mxu0 }
 0x5e4   :  { %v4635_v33 = vpop.f32.mrf.mxu1 }
 0x5e5   :  { %v3902_v34 = vpop.f32.mrf.mxu0 }
 0x5e6   :  { %v3895_v36 = vpop.f32.mrf.mxu1 }
 0x5eb   :  { %v1766_v38 = vpop.f32.mrf.mxu0 }
 0x5ec   :  { %v2016_v39 = vsel %vm323_vm2, %v1766_v38, -inf }
 0x5ed   :  { %2017 = vmax.xlane.f32.xlu0 %v2016_v39  ;;  %v3916_v41 = vpop.f32.mrf.mxu0 }
 0x5f3   :  { %v1930_v43 = vpop.f32.mrf.mxu0 }
 0x5f4   :  { %v2022_v45 = vsel %vm323_vm2, %v1930_v43, -inf }
 0x5f5   :  { %2023 = vmax.xlane.f32.xlu0 %v2022_v45  ;;  %v3930_v48 = vpop.f32.mrf.mxu0 }
 0x619   :  { %v4639_v50 = vpop.f32.mrf.mxu1 }
 0x61b   :  { %v3909_v55 = vpop.f32.mrf.mxu1 }
 0x621   :  { %v1848_v56 = vpop.f32.mrf.mxu1 }
 0x622   :  { %v2019_v57 = vsel %vm323_vm2, %v1848_v56, -inf }
 0x623   :  { %2020 = vmax.xlane.f32.xlu1 %v2019_v57  ;;  %v3923_v58 = vpop.f32.mrf.mxu1 }
 0x629   :  { %v2012_v59 = vpop.f32.mrf.mxu1 }
 0x62a   :  { %v2025_v60 = vsel %vm323_vm2, %v2012_v59, -inf }
 0x62b   :  { %v3937_v61 = vpop.f32.mrf.mxu1  ;;  %2026 = vmax.xlane.f32.xlu0 %v2025_v60 }
 0x634   :  { %2141 = vrot.lane.b32.xlu1 %v4373_v40, %s4220_s6 }
 0x638   :  { %2060 = vrot.lane.b32.xlu1 %v4363_v37, %s4220_s6 }
 0x63c   :  { %2139 = vrot.lane.b32.xlu1 %v4388_v46, %s4220_s6 }
 0x640   :  { %2299 = vrot.lane.b32.xlu1 %v4400_v49, %s4220_s6 }
 0x641   :  { %2062 = vrot.lane.b32.xlu0 %v4361_v35, %s4220_s6 }
 0x644   :  { %2297 = vrot.lane.b32.xlu1 %v4418_v53, %s4220_s6 }
 0x645   :  { %2220 = vrot.lane.b32.xlu0 %v4382_v44, %s4220_s6 }
 0x648   :  { %2462 = vrot.lane.b32.xlu1 %v4373_v40, %s4221_s7 }
 0x649   :  { %2218 = vrot.lane.b32.xlu0 %v4394_v47, %s4220_s6 }
 0x64c   :  { %2460 = vrot.lane.b32.xlu1 %v4388_v46, %s4221_s7 }
 0x64d   :  { %2380 = vrot.lane.b32.xlu0 %v4361_v35, %s4221_s7 }
 0x651   :  { %2378 = vrot.lane.b32.xlu0 %v4363_v37, %s4221_s7 }
 0x676   :  { %v2018_v62 = vpop.xlane.xlu0 %2017 }
 0x677   :  { %v2028_v63 = vsub.f32 %v1766_v38, %v2018_v62 }
 0x679   :  { %v2032_v0 = vmul.f32 1.442695, %v2028_v63 }
 0x67b   :  { %4148 = vpow2.f32 %v2032_v0 }
 0x67e   :  { %v2024_v1 = vpop.xlane.xlu0 %2023 }
 0x67f   :  { %v2030_v2 = vsub.f32 %v1930_v43, %v2024_v1 }
 0x681   :  { %v2036_v3 = vmul.f32 1.442695, %v2030_v2 }
 0x683   :  { %4150 = vpow2.f32 %v2036_v3 }
 0x688   :  { %v4149_v5 = vpop.eup %4148 }
 0x689   :  { %v2040_v7 = vsel %vm323_vm2, %v4149_v5, 0.0 }
 0x68a   :  { %2041 = vadd.xlane.f32.xlu0 %v2040_v7 }
 0x690   :  { %v4151_v9 = vpop.eup %4150 }
 0x691   :  { %v2046_v10 = vsel %vm323_vm2, %v4151_v9, 0.0 }
 0x692   :  { %2047 = vadd.xlane.f32.xlu0 %v2046_v10 }
 0x6a8   :  { %2376 = vrot.lane.b32.xlu0 %v4379_v42, %s4221_s7 }
 0x6ac   :  { %v2021_v12 = vpop.xlane.xlu1 %2020  ;;  %2458 = vrot.lane.b32.xlu0 %v4410_v51, %s4221_s7 }
 0x6ad   :  { %v2029_v13 = vsub.f32 %v1848_v56, %v2021_v12 }
 0x6af   :  { %v2034_v14 = vmul.f32 1.442695, %v2029_v13 }
 0x6b0   :  { %v2142_v15 = vpop.permute.xlu1 %2141  ;;  %2542 = vrot.lane.b32.xlu0 %v4394_v47, %s4221_s7 }
 0x6b1   :  { %4152 = vpow2.f32 %v2034_v14  ;;  %3946 = vmatpush3.msra.mxu1 %v2142_v15 }
 0x6b2   :  { %3947 = vmatprep.subr.mxu1 %v4214_v28 }
 0x6b4   :  { %v2061_v16 = vpop.permute.xlu1 %2060  ;;  %v2027_v17 = vpop.xlane.xlu0 %2026  ;;  %2540 = vrot.lane.b32.xlu0 %v4412_v52, %s4221_s7 }
 0x6b5   :  { %v2031_v20 = vsub.f32 %v2012_v59, %v2027_v17 }
 0x6b7   :  { %v2038_v52 = vmul.f32 1.442695, %v2031_v20 }
 0x6b8   :  { %v2140_v42 = vpop.permute.xlu1 %2139  ;;  %v2063_v18 = vpop.permute.xlu0 %2062 }
 0x6b9   :  { %3939 = vmatpush3.msra.mxu0 %v2063_v18  ;;  %3948 = vmatpush3.msra.mxu1 %v2140_v42  ;;  %4154 = vpow2.f32 %v2038_v52 }
 0x6ba   :  { %3940 = vmatprep.subr.mxu0 %v4214_v28  ;;  %3959 = vmatprep.subr.mxu1 %v4214_v28 }
 0x6bb   :  { %3941 = vmatpush3.msra.mxu0 %v2061_v16 }
 0x6bc   :  { %3952 = vmatprep.subr.mxu0 %v4214_v28  ;;  %v2221_v23 = vpop.permute.xlu0 %2220  ;;  %v2300_v38 = vpop.permute.xlu1 %2299 }
 0x6be   :  { %v4153_v51 = vpop.eup %4152 }
 0x6bf   :  { %v2043_v19 = vsel %vm323_vm2, %v4153_v51, 0.0 }
 0x6c0   :  { %2044 = vadd.xlane.f32.xlu1 %v2043_v19  ;;  %v2219_v24 = vpop.permute.xlu0 %2218  ;;  %v2298_v41 = vpop.permute.xlu1 %2297 }
 0x6c4   :  { %v2381_v25 = vpop.permute.xlu0 %2380  ;;  %v2463_v43 = vpop.permute.xlu1 %2462 }
 0x6c6   :  { %v4155_v21 = vpop.eup %4154 }
 0x6c7   :  { %v2049_v22 = vsel %vm323_vm2, %v4155_v21, 0.0 }
 0x6c8   :  { %v2379_v26 = vpop.permute.xlu0 %2378  ;;  %v2461_v45 = vpop.permute.xlu1 %2460 }
 0x6d1   :  { %2544 = vrot.lane.b32.xlu1 %v4382_v44, %s4221_s7 }
 0x6f5   :  { %2050 = vadd.xlane.f32.xlu1 %v2049_v22 }
 0x706   :  { %2626 = vrot.lane.b32.xlu1 %v4400_v49, %s4221_s7 }
 0x70a   :  { %2624 = vrot.lane.b32.xlu1 %v4418_v53, %s4221_s7 }
 0x70e   :  { %2622 = vrot.lane.b32.xlu1 %v4437_v54, %s4221_s7 }
 0x713   :  { %v2042_v27 = vpop.xlane.xlu0 %2041 }
 0x714   :  { %4156 = vrcp.f32 %v2042_v27 }
 0x71b   :  { %v2048_v29 = vpop.xlane.xlu0 %2047 }
 0x71c   :  { %4158 = vrcp.f32 %v2048_v29 }
 0x71f   :  { %v2377_v39 = vpop.permute.xlu0 %2376 }
 0x721   :  { %v4157_v31 = vpop.eup %4156 }
 0x722   :  { %v2056_v34 = vmul.f32 %v4157_v31, %v4149_v5 }
 0x723   :  { %v2459_v48 = vpop.permute.xlu0 %2458 }
 0x724   :  { %3943 = vmatmul.mubr.msk.f32.vlgmr.msra.gmra.mxu0 %vm323_vm2, %v2056_v34 }
 0x725   :  { %3953 = vmatpush3.msra.mxu0 %v2221_v23  ;;  %3956 = vmatprep.mubr.msk.f32.mxu0 %vm4215_vm1, %v4214_v28 }
 0x726   :  { %3954 = vmatprep.subr.mxu0 %v4214_v28 }
 0x727   :  { %3955 = vmatpush3.msra.mxu0 %v2219_v24  ;;  %v2543_v57 = vpop.permute.xlu0 %2542 }
 0x728   :  { %3966 = vmatprep.subr.mxu0 %v4214_v28 }
 0x729   :  { %v4159_v36 = vpop.eup %4158 }
 0x72a   :  { %v2058_v54 = vmul.f32 %v4159_v36, %v4151_v9 }
 0x72b   :  { %v2541_v58 = vpop.permute.xlu0 %2540 }
 0x72c   :  { %3957 = vmatmul.mubr.msk.f32.vlgmr.msra.gmra.mxu0 %vm323_vm2, %v2058_v54 }
 0x72d   :  { %3967 = vmatpush3.xpose.msk.msra.mxu0 %vm323_vm2, %v2381_v25  ;;  %3970 = vmatprep.mubr.msk.f32.mxu0 %vm4215_vm1, %v4214_v28 }
 0x72e   :  { %3968 = vmatprep.subr.mxu0 %v4214_v28 }
 0x731   :  { %3969 = vmatpush3.xpose.msk.msra.mxu0 %vm323_vm2, %v2379_v26 }
 0x732   :  { %3980 = vmatprep.subr.mxu0 %v4214_v28 }
 0x734   :  { %3971 = vmatmul.mubr.msk.f32.vlgmr.msra.gmra.mxu0 %vm323_vm2, %v2377_v39 }
 0x735   :  { %3984 = vmatprep.mubr.msk.f32.mxu0 %vm4215_vm1, %v4214_v28 }
 0x749   :  { %v2045_v55 = vpop.xlane.xlu1 %2044 }
 0x74a   :  { %4160 = vrcp.f32 %v2045_v55 }
 0x74d   :  { %v2545_v56 = vpop.permute.xlu1 %2544 }
 0x74e   :  { %3981 = vmatpush3.xpose.msk.msra.mxu0 %vm323_vm2, %v2545_v56 }
 0x74f   :  { %3982 = vmatprep.subr.mxu0 %v4214_v28 }
 0x752   :  { %3983 = vmatpush3.xpose.msk.msra.mxu0 %vm323_vm2, %v2543_v57 }
 0x753   :  { %3994 = vmatprep.subr.mxu0 %v4214_v28 }
 0x755   :  { %3985 = vmatmul.mubr.msk.f32.vlgmr.msra.gmra.mxu0 %vm323_vm2, %v2541_v58 }
 0x756   :  { %3998 = vmatprep.mubr.msk.f32.mxu0 %vm4215_vm1, %v4214_v28 }
 0x757   :  { %v4161_v59 = vpop.eup %4160 }
 0x758   :  { %v2057_v60 = vmul.f32 %v4161_v59, %v4153_v51 }
 0x75a   :  { %3950 = vmatmul.mubr.msk.f32.vlgmr.msra.gmra.mxu1 %vm323_vm2, %v2057_v60 }
 0x75b   :  { %3960 = vmatpush3.msra.mxu1 %v2300_v38  ;;  %3963 = vmatprep.mubr.msk.f32.mxu1 %vm4215_vm1, %v4214_v28 }
 0x75c   :  { %3961 = vmatprep.subr.mxu1 %v4214_v28 }
 0x75d   :  { %3962 = vmatpush3.msra.mxu1 %v2298_v41 }
 0x75e   :  { %3973 = vmatprep.subr.mxu1 %v4214_v28 }
 0x77e   :  { %v2051_v61 = vpop.xlane.xlu1 %2050 }
 0x77f   :  { %4162 = vrcp.f32 %v2051_v61 }
 0x782   :  { %v2627_v0 = vpop.permute.xlu1 %2626 }
 0x786   :  { %v2625_v1 = vpop.permute.xlu1 %2624 }
 0x78a   :  { %v2623_v2 = vpop.permute.xlu1 %2622 }
 0x78c   :  { %v4163_v62 = vpop.eup %4162 }
 0x78d   :  { %v2059_v63 = vmul.f32 %v4163_v62, %v4155_v21 }
 0x78f   :  { %3964 = vmatmul.mubr.msk.f32.vlgmr.msra.gmra.mxu1 %vm323_vm2, %v2059_v63 }
 0x790   :  { %3974 = vmatpush3.xpose.msk.msra.mxu1 %vm323_vm2, %v2463_v43  ;;  %3977 = vmatprep.mubr.msk.f32.mxu1 %vm4215_vm1, %v4214_v28 }
 0x791   :  { %3975 = vmatprep.subr.mxu1 %v4214_v28 }
 0x794   :  { %3976 = vmatpush3.xpose.msk.msra.mxu1 %vm323_vm2, %v2461_v45 }
 0x795   :  { %3987 = vmatprep.subr.mxu1 %v4214_v28 }
 0x797   :  { %3978 = vmatmul.mubr.msk.f32.vlgmr.msra.gmra.mxu1 %vm323_vm2, %v2459_v48 }
 0x798   :  { %3988 = vmatpush3.xpose.msk.msra.mxu1 %vm323_vm2, %v2627_v0  ;;  %3991 = vmatprep.mubr.msk.f32.mxu1 %vm4215_vm1, %v4214_v28 }
 0x799   :  { %3989 = vmatprep.subr.mxu1 %v4214_v28 }
 0x79c   :  { %3990 = vmatpush3.xpose.msk.msra.mxu1 %vm323_vm2, %v2625_v1 }
 0x79d   :  { %4001 = vmatprep.subr.mxu1 %v4214_v28 }
 0x79f   :  { %3992 = vmatmul.mubr.msk.f32.vlgmr.msra.gmra.mxu1 %vm323_vm2, %v2623_v2 }
 0x7a0   :  { %4005 = vmatprep.mubr.msk.f32.mxu1 %vm4215_vm1, %v4214_v28 }
 0x7e4   :  { %v2135_v3 = vpop.f32.mrf.mxu0 }
 0x7e6   :  { %v3944_v5 = vpop.f32.mrf.mxu0 }
 0x7ec   :  { %v2293_v7 = vpop.f32.mrf.mxu0 }
 0x7ee   :  { %v3958_v9 = vpop.f32.mrf.mxu0 }
 0x7ef   :  { %v64_v9 = vld [vmem:[%s4968_s3 + $0x78] sm:$0xff] }
 0x7f4   :  { %v2454_v10 = vpop.f32.mrf.mxu0 }
 0x7f5   :  { %v2704_v12 = vsel %vm323_vm2, %v2454_v10, -inf }
 0x7f6   :  { %2705 = vmax.xlane.f32.xlu0 %v2704_v12  ;;  %v3972_v13 = vpop.f32.mrf.mxu0  ;;  %v61_v12 = vld [vmem:[%s4968_s3 + $0x60] sm:$0xff] }
 0x7f7   :  { %v60_v13 = vld [vmem:[%s4968_s3 + $0x58] sm:$0xff] }
 0x815   :  { %v2618_v14 = vpop.f32.mrf.mxu0 }
 0x816   :  { %v2710_v15 = vsel %vm323_vm2, %v2618_v14, -inf }
 0x817   :  { %2711 = vmax.xlane.f32.xlu0 %v2710_v15  ;;  %v3986_v16 = vpop.f32.mrf.mxu0  ;;  %v58_v15 = vld [vmem:[%s4968_s3 + $0x48] sm:$0xff] }
 0x81a   :  { %v4737_v17 = vpop.f32.mrf.mxu1 }
 0x81c   :  { %v3951_v42 = vpop.f32.mrf.mxu1 }
 0x81d   :  { %v57_v42 = vld [vmem:[%s4968_s3 + $0x40] sm:$0xff] }
 0x84f   :  { %v4739_v18 = vpop.f32.mrf.mxu1 }
 0x851   :  { %v3965_v51 = vpop.f32.mrf.mxu1 }
 0x852   :  { %v47_v51 = vld [vmem:[%s4967_s2 + $0x68] sm:$0xff] }
 0x857   :  { %v2536_v19 = vpop.f32.mrf.mxu1 }
 0x858   :  { %v2707_v20 = vsel %vm323_vm2, %v2536_v19, -inf }
 0x859   :  { %2708 = vmax.xlane.f32.xlu1 %v2707_v20  ;;  %v3979_v52 = vpop.f32.mrf.mxu1 }
 0x85f   :  { %v2700_v21 = vpop.f32.mrf.mxu1 }
 0x860   :  { %v2713_v22 = vsel %vm323_vm2, %v2700_v21, -inf }
 0x861   :  { %v3993_v23 = vpop.f32.mrf.mxu1  ;;  %2714 = vmax.xlane.f32.xlu0 %v2713_v22 }
 0x86a   :  { %2829 = vrot.lane.b32.xlu1 %v4373_v40, %s4222_s8 }
 0x86e   :  { %2748 = vrot.lane.b32.xlu1 %v4363_v37, %s4222_s8 }
 0x872   :  { %2827 = vrot.lane.b32.xlu1 %v4388_v46, %s4222_s8 }
 0x876   :  { %2987 = vrot.lane.b32.xlu1 %v4400_v49, %s4222_s8 }
 0x877   :  { %2750 = vrot.lane.b32.xlu0 %v4361_v35, %s4222_s8 }
 0x87b   :  { %2908 = vrot.lane.b32.xlu0 %v4382_v44, %s4222_s8 }
 0x87f   :  { %v2706_v24 = vpop.xlane.xlu0 %2705 }
 0x880   :  { %v2716_v25 = vsub.f32 %v2454_v10, %v2706_v24  ;;  %v63_v10 = vld [vmem:[%s4968_s3 + $0x70] sm:$0xff] }
 0x882   :  { %v2720_v26 = vmul.f32 1.442695, %v2716_v25 }
 0x884   :  { %4164 = vpow2.f32 %v2720_v26 }
 0x891   :  { %v4165_v40 = vpop.eup %4164 }
 0x892   :  { %v2728_v27 = vsel %vm323_vm2, %v4165_v40, 0.0 }
 0x89a   :  { %2729 = vadd.xlane.f32.xlu0 %v2728_v27 }
 0x8a0   :  { %v2712_v37 = vpop.xlane.xlu0 %2711 }
 0x8a1   :  { %v2718_v29 = vsub.f32 %v2618_v14, %v2712_v37  ;;  %v59_v14 = vld [vmem:[%s4968_s3 + $0x50] sm:$0xff] }
 0x8a3   :  { %v2724_v46 = vmul.f32 1.442695, %v2718_v29 }
 0x8a5   :  { %4166 = vpow2.f32 %v2724_v46 }
 0x8b2   :  { %v4167_v31 = vpop.eup %4166 }
 0x8b3   :  { %v2734_v49 = vsel %vm323_vm2, %v4167_v31, 0.0 }
 0x8b4   :  { %2735 = vadd.xlane.f32.xlu0 %v2734_v49 }
 0x8ca   :  { %2906 = vrot.lane.b32.xlu0 %v4394_v47, %s4222_s8 }
 0x8ce   :  { %3068 = vrot.lane.b32.xlu0 %v4631_v30, %s4222_s8 }
 0x8d2   :  { %3084 = vrot.lane.b32.xlu0 %v2135_v3, %s4220_s6 }
 0x8d6   :  { %3072 = vrot.lane.b32.xlu0 %v4633_v32, %s4222_s8 }
 0x8da   :  { %3088 = vrot.lane.b32.xlu0 %v2293_v7, %s4220_s6 }
 0x8e2   :  { %v2709_v35 = vpop.xlane.xlu1 %2708 }
 0x8e3   :  { %v2717_v44 = vsub.f32 %v2536_v19, %v2709_v35  ;;  %v46_v19 = vld [vmem:[%s4967_s2 + $0x58] sm:$0xff] }
 0x8e5   :  { %v2722_v34 = vmul.f32 1.442695, %v2717_v44 }
 0x8e6   :  { %v2830_v36 = vpop.permute.xlu1 %2829 }
 0x8e7   :  { %4168 = vpow2.f32 %v2722_v34  ;;  %4002 = vmatpush3.msra.mxu1 %v2830_v36 }
 0x8e8   :  { %4003 = vmatprep.subr.mxu1 %v4214_v28 }
 0x8ea   :  { %v2749_v54 = vpop.permute.xlu1 %2748  ;;  %v2715_v47 = vpop.xlane.xlu0 %2714 }
 0x8eb   :  { %v2719_v38 = vsub.f32 %v2700_v21, %v2715_v47 }
 0x8ed   :  { %v2726_v39 = vmul.f32 1.442695, %v2719_v38 }
 0x8ee   :  { %v2828_v30 = vpop.permute.xlu1 %2827  ;;  %v2751_v41 = vpop.permute.xlu0 %2750 }
 0x8ef   :  { %4170 = vpow2.f32 %v2726_v39  ;;  %3995 = vmatpush3.msra.mxu0 %v2751_v41  ;;  %4004 = vmatpush3.msra.mxu1 %v2828_v30 }
 0x8f0   :  { %3996 = vmatprep.subr.mxu0 %v4214_v28  ;;  %4015 = vmatprep.subr.mxu1 %v4214_v28 }
 0x8f1   :  { %3997 = vmatpush3.msra.mxu0 %v2749_v54 }
 0x8f2   :  { %4008 = vmatprep.subr.mxu0 %v4214_v28  ;;  %v2909_v55 = vpop.permute.xlu0 %2908  ;;  %v2988_v60 = vpop.permute.xlu1 %2987 }
 0x8f4   :  { %v4169_v32 = vpop.eup %4168 }
 0x8f5   :  { %v2731_v43 = vsel %vm323_vm2, %v4169_v32, 0.0 }
 0x8f6   :  { %2732 = vadd.xlane.f32.xlu1 %v2731_v43  ;;  %v44_v43 = vld [vmem:[%s4967_s2 + $0x38] sm:$0xff] }
 0x8fc   :  { %v4171_v45 = vpop.eup %4170 }
 0x8fd   :  { %v2737_v48 = vsel %vm323_vm2, %v4171_v45, 0.0 }
 0x8fe   :  { %2738 = vadd.xlane.f32.xlu1 %v2737_v48  ;;  %v41_v48 = vld [vmem:[%s4967_s2 + $0x8] sm:$0xff] }
 0x90f   :  { %2985 = vrot.lane.b32.xlu1 %v4418_v53, %s4222_s8 }
 0x913   :  { %3070 = vrot.lane.b32.xlu1 %v4635_v33, %s4222_s8 }
 0x917   :  { %3086 = vrot.lane.b32.xlu1 %v4737_v17, %s4220_s6 }
 0x91b   :  { %3074 = vrot.lane.b32.xlu1 %v4639_v50, %s4222_s8 }
 0x91f   :  { %3090 = vrot.lane.b32.xlu1 %v4739_v18, %s4220_s6  ;;  %v48_v18 = vld [vmem:[%s4967_s2 + $0x78] sm:$0xff] }
 0x923   :  { %v2730_v56 = vpop.xlane.xlu0 %2729 }
 0x924   :  { %4172 = vrcp.f32 %v2730_v56  ;;  %v79_v56 = vld [vmem:[%s4968_s3 + $0xf0] sm:$0xff] }
 0x931   :  { %v4173_v57 = vpop.eup %4172 }
 0x932   :  { %v2744_v58 = vmul.f32 %v4173_v57, %v4165_v40  ;;  %v78_v57 = vld [vmem:[%s4968_s3 + $0xe8] sm:$0xff] }
 0x934   :  { %3999 = vmatmul.mubr.msk.f32.vlgmr.msra.gmra.mxu0 %vm323_vm2, %v2744_v58  ;;  %v3571_v58 = vld [vmem:[%s4969_s4 + $0x3] ss:$0 sm:$0xff] }
 0x935   :  { %4009 = vmatpush3.msra.mxu0 %v2909_v55  ;;  %4012 = vmatprep.mubr.msk.f32.mxu0 %vm4215_vm1, %v4214_v28  ;;  %v80_v55 = vld [vmem:[%s4968_s3 + $0xf8] sm:$0xff] }
 0x936   :  { %4010 = vmatprep.subr.mxu0 %v4214_v28 }
 0x93d   :  { %v2736_v53 = vpop.xlane.xlu0 %2735 }
 0x93e   :  { %4174 = vrcp.f32 %v2736_v53 }
 0x941   :  { %v2907_v33 = vpop.permute.xlu0 %2906 }
 0x942   :  { %4011 = vmatpush3.msra.mxu0 %v2907_v33  ;;  %v3572_v33 = vld [vmem:[%s4969_s4 + $0x4] ss:$0 sm:$0xff] }
 0x943   :  { %4022 = vmatprep.subr.mxu0 %v64_v9 }
 0x945   :  { %v3069_v52 = vpop.permute.xlu0 %3068 }
 0x946   :  { %v3112_v40 = vsel %vm323_vm2, %v4527_v4, %v3069_v52  ;;  %v70_v52 = vld [vmem:[%s4968_s3 + $0xa8] sm:$0xff] }
 0x949   :  { %v3085_v22 = vpop.permute.xlu0 %3084 }
 0x94a   :  { %v3117_v27 = vsel %vm3116_vm3, %v3112_v40, %v3085_v22  ;;  %v68_v22 = vld [vmem:[%s4968_s3 + $0x98] sm:$0xff] }
 0x94b   :  { %v4175_v50 = vpop.eup %4174 }
 0x94c   :  { %v2746_v59 = vmul.f32 %v4175_v50, %v4167_v31 }
 0x94d   :  { %v3073_v25 = vpop.permute.xlu0 %3072 }
 0x94e   :  { %4013 = vmatmul.mubr.msk.f32.vlgmr.msra.gmra.mxu0 %vm323_vm2, %v2746_v59  ;;  %v3114_v36 = vsel %vm323_vm2, %v4531_v8, %v3073_v25  ;;  %v65_v25 = vld [vmem:[%s4968_s3 + $0x80] sm:$0xff] }
 0x94f   :  { %4023 = vmatpush3.msra.mxu0 %v64_v9 }
 0x950   :  { %4024 = vmatprep.subr.mxu0 %v63_v10 }
 0x951   :  { %4025 = vmatpush3.msra.mxu0 %v63_v10  ;;  %v3089_v26 = vpop.permute.xlu0 %3088 }
 0x952   :  { %v3119_v47 = vsel %vm3116_vm3, %v3114_v36, %v3089_v26  ;;  %v3573_v26 = vld [vmem:[%s4969_s4 + $0x2] ss:$0 sm:$0xff] }
 0x97f   :  { %v2733_v61 = vpop.xlane.xlu1 %2732 }
 0x980   :  { %4176 = vrcp.f32 %v2733_v61 }
 0x987   :  { %v2739_v62 = vpop.xlane.xlu1 %2738 }
 0x988   :  { %4178 = vrcp.f32 %v2739_v62 }
 0x98b   :  { %v2986_v1 = vpop.permute.xlu1 %2985 }
 0x98d   :  { %v4177_v63 = vpop.eup %4176 }
 0x98e   :  { %v2745_v0 = vmul.f32 %v4177_v63, %v4169_v32  ;;  %v45_v32 = vld [vmem:[%s4967_s2 + $0x48] sm:$0xff]  ;;  %v4188_v63 = vld [vmem:[%s4965_s0] sm:$0xff] }
 0x98f   :  { %v3071_v46 = vpop.permute.xlu1 %3070 }
 0x990   :  { %4006 = vmatmul.mubr.msk.f32.vlgmr.msra.gmra.mxu1 %vm323_vm2, %v2745_v0  ;;  %v3113_v44 = vsel %vm323_vm2, %v4529_v6, %v3071_v46 }
 0x991   :  { %4016 = vmatpush3.msra.mxu1 %v2988_v60  ;;  %4019 = vmatprep.mubr.msk.f32.mxu1 %vm4215_vm1, %v4214_v28 }
 0x992   :  { %4017 = vmatprep.subr.mxu1 %v4214_v28  ;;  %v62_v28 = vld [vmem:[%s4968_s3 + $0x68] sm:$0xff] }
 0x993   :  { %4018 = vmatpush3.msra.mxu1 %v2986_v1  ;;  %4026 = vmatprep.subr.mxu0 %v62_v28  ;;  %v3087_v31 = vpop.permute.xlu1 %3086  ;;  %v4189_v1 = vld [vmem:[%s4965_s0 + $0x8] sm:$0xff] }
 0x994   :  { %4027 = vmatpush3.msra.mxu0 %v62_v28  ;;  %4044 = vmatprep.subr.mxu1 %v48_v18  ;;  %v3118_v4 = vsel %vm3116_vm3, %v3113_v44, %v3087_v31 }
 0x995   :  { %v4179_v2 = vpop.eup %4178  ;;  %4028 = vmatprep.subr.mxu0 %v61_v12 }
 0x996   :  { %v2747_v3 = vmul.f32 %v4179_v2, %v4171_v45  ;;  %4029 = vmatpush3.msra.mxu0 %v61_v12  ;;  %v42_v45 = vld [vmem:[%s4967_s2 + $0x18] sm:$0xff]  ;;  %v4190_v12 = vld [vmem:[%s4965_s0 + $0x10] sm:$0xff] }
 0x997   :  { %4030 = vmatprep.subr.mxu0 %v60_v13  ;;  %v3075_v49 = vpop.permute.xlu1 %3074 }
 0x998   :  { %4020 = vmatmul.mubr.msk.f32.vlgmr.msra.gmra.mxu1 %vm323_vm2, %v2747_v3  ;;  %4031 = vmatpush3.msra.mxu0 %v60_v13  ;;  %v3115_v6 = vsel %vm323_vm2, %v4533_v11, %v3075_v49  ;;  %v43_v11 = vld [vmem:[%s4967_s2 + $0x28] sm:$0xff] }
 0x999   :  { %4032 = vmatprep.subr.mxu0 %v59_v14  ;;  %4045 = vmatpush3.msra.mxu1 %v48_v18  ;;  %v74_v18 = vld [vmem:[%s4968_s3 + $0xc8] sm:$0xff] }
 0x99a   :  { %4033 = vmatpush3.msra.mxu0 %v59_v14  ;;  %4046 = vmatprep.subr.mxu1 %v47_v51  ;;  %v4191_v14 = vld [vmem:[%s4965_s0 + $0x18] sm:$0xff] }
 0x99b   :  { %4034 = vmatprep.subr.mxu0 %v58_v15  ;;  %4047 = vmatpush3.msra.mxu1 %v47_v51  ;;  %v3091_v35 = vpop.permute.xlu1 %3090  ;;  %v73_v51 = vld [vmem:[%s4968_s3 + $0xc0] sm:$0xff] }
 0x99c   :  { %4035 = vmatpush3.msra.mxu0 %v58_v15  ;;  %4048 = vmatprep.subr.mxu1 %v46_v19  ;;  %v3120_v30 = vsel %vm3116_vm3, %v3115_v6, %v3091_v35 }
 0x99d   :  { %4036 = vmatprep.subr.mxu0 %v57_v42  ;;  %4049 = vmatpush3.msra.mxu1 %v46_v19  ;;  %v72_v19 = vld [vmem:[%s4968_s3 + $0xb8] sm:$0xff] }
 0x99e   :  { %4037 = vmatpush3.msra.mxu0 %v57_v42  ;;  %4050 = vmatprep.subr.mxu1 %v45_v32  ;;  %v75_v42 = vld [vmem:[%s4968_s3 + $0xd0] sm:$0xff] }
 0x99f   :  { %4051 = vmatpush3.msra.mxu1 %v45_v32  ;;  %4066 = vmatprep.subr.mxu0 %v80_v55 }
 0x9a0   :  { %4052 = vmatprep.subr.mxu1 %v44_v43 }
 0x9a1   :  { %4053 = vmatpush3.msra.mxu1 %v44_v43 }
 0x9a2   :  { %4054 = vmatprep.subr.mxu1 %v43_v11 }
 0x9a3   :  { %4055 = vmatpush3.msra.mxu1 %v43_v11 }
 0x9a4   :  { %4056 = vmatprep.subr.mxu1 %v42_v45 }
 0x9a5   :  { %4057 = vmatpush3.msra.mxu1 %v42_v45 }
 0x9a6   :  { %4058 = vmatprep.subr.mxu1 %v41_v48 }
 0x9a7   :  { %4059 = vmatpush3.msra.mxu1 %v41_v48 }
 0x9f4   :  { %v2823_v5 = vpop.f32.mrf.mxu0 }
 0x9f5   :  { %3100 = vrot.lane.b32.xlu0 %v2823_v5, %s4218_s29 }
 0x9f6   :  { %v4000_v7 = vpop.f32.mrf.mxu0 }
 0xa0e   :  { %v2981_v16 = vpop.f32.mrf.mxu0 }
 0xa0f   :  { %3104 = vrot.lane.b32.xlu0 %v2981_v16, %s4218_s29  ;;  %v77_v16 = vld [vmem:[%s4968_s3 + $0xe0] sm:$0xff] }
 0xa10   :  { %v4014_v17 = vpop.f32.mrf.mxu0 }
 0xa11   :  { %v76_v17 = vld [vmem:[%s4968_s3 + $0xd8] sm:$0xff] }
 0xa50   :  { %v2902_v20 = vpop.f32.mrf.mxu1 }
 0xa51   :  { %3102 = vrot.lane.b32.xlu1 %v2902_v20, %s4218_s29  ;;  %v71_v20 = vld [vmem:[%s4968_s3 + $0xb0] sm:$0xff] }
 0xa52   :  { %v4007_v21 = vpop.f32.mrf.mxu1 }
 0xa53   :  { %v69_v21 = vld [vmem:[%s4968_s3 + $0xa0] sm:$0xff] }
 0xa58   :  { %v3060_v23 = vpop.f32.mrf.mxu1 }
 0xa59   :  { %3106 = vrot.lane.b32.xlu1 %v3060_v23, %s4218_s29  ;;  %v67_v23 = vld [vmem:[%s4968_s3 + $0x90] sm:$0xff] }
 0xa5a   :  { %v4021_v24 = vpop.f32.mrf.mxu1 }
 0xa5b   :  { %v66_v24 = vld [vmem:[%s4968_s3 + $0x88] sm:$0xff] }
 0xa67   :  { %v3101_v37 = vpop.permute.xlu0 %3100 }
 0xa68   :  { %v3122_v29 = vsel %vm3121_vm4, %v3117_v27, %v3101_v37 }
 0xa69   :  { %4038 = vmatprep.mubr.msk.f32.mxu0 %vm92_vm0, %v3122_v29 }
 0xa81   :  { %v3105_v34 = vpop.permute.xlu0 %3104 }
 0xa82   :  { %v3124_v39 = vsel %vm3121_vm4, %v3119_v47, %v3105_v34 }
 0xac3   :  { %v3103_v54 = vpop.permute.xlu1 %3102 }
 0xac4   :  { %v3123_v38 = vsel %vm3121_vm4, %v3118_v4, %v3103_v54 }
 0xac5   :  { %4039 = vmatmul.mubr.msk.f32.vlgmr.msra.gmra.mxu0 %vm92_vm0, %v3123_v38 }
 0xac6   :  { %4041 = vmatprep.mubr.msk.f32.mxu0 %vm92_vm0, %v3124_v39  ;;  %4067 = vmatpush3.msra.mxu0 %v80_v55 }
 0xac7   :  { %4068 = vmatprep.subr.mxu0 %v79_v56 }
 0xac8   :  { %4069 = vmatpush3.msra.mxu0 %v79_v56 }
 0xac9   :  { %4070 = vmatprep.subr.mxu0 %v78_v57 }
 0xaca   :  { %4071 = vmatpush3.msra.mxu0 %v78_v57 }
 0xacb   :  { %v3107_v41 = vpop.permute.xlu1 %3106  ;;  %4072 = vmatprep.subr.mxu0 %v77_v16 }
 0xacc   :  { %v3125_v8 = vsel %vm3121_vm4, %v3120_v30, %v3107_v41  ;;  %4073 = vmatpush3.msra.mxu0 %v77_v16 }
 0xacd   :  { %4042 = vmatmul.mubr.msk.f32.gmra.mxu0 %vm92_vm0, %v3125_v8  ;;  %4074 = vmatprep.subr.mxu0 %v76_v17 }
 0xace   :  { %4075 = vmatpush3.msra.mxu0 %v76_v17 }
 0xacf   :  { %4076 = vmatprep.subr.mxu0 %v75_v42 }
 0xad0   :  { %4077 = vmatpush3.msra.mxu0 %v75_v42 }
 0xad1   :  { %4078 = vmatprep.subr.mxu0 %v74_v18 }
 0xad2   :  { %4079 = vmatpush3.msra.mxu0 %v74_v18 }
 0xad3   :  { %4080 = vmatprep.subr.mxu0 %v73_v51 }
 0xad4   :  { %4081 = vmatpush3.msra.mxu0 %v73_v51 }
 0xad5   :  { %4082 = vmatprep.subr.mxu0 %v72_v19 }
 0xad6   :  { %4083 = vmatpush3.msra.mxu0 %v72_v19 }
 0xad7   :  { %4084 = vmatprep.subr.mxu0 %v71_v20 }
 0xad8   :  { %4085 = vmatpush3.msra.mxu0 %v71_v20 }
 0xad9   :  { %4086 = vmatprep.subr.mxu0 %v70_v52 }
 0xada   :  { %4087 = vmatpush3.msra.mxu0 %v70_v52 }
 0xadb   :  { %4088 = vmatprep.subr.mxu0 %v69_v21 }
 0xadc   :  { %4089 = vmatpush3.msra.mxu0 %v69_v21 }
 0xadd   :  { %4090 = vmatprep.subr.mxu0 %v68_v22 }
 0xade   :  { %4091 = vmatpush3.msra.mxu0 %v68_v22 }
 0xadf   :  { %4092 = vmatprep.subr.mxu0 %v67_v23 }
 0xae0   :  { %4093 = vmatpush3.msra.mxu0 %v67_v23 }
 0xae1   :  { %4094 = vmatprep.subr.mxu0 %v66_v24 }
 0xae2   :  { %4095 = vmatpush3.msra.mxu0 %v66_v24 }
 0xae3   :  { %4096 = vmatprep.subr.mxu0 %v65_v25 }
 0xae4   :  { %4097 = vmatpush3.msra.mxu0 %v65_v25 }
 0xb85   :  { %v4040_v53 = vpop.f32.mrf.mxu0 }
 0xb86   :  { %v3228_v50 = vmul.f32 %v4040_v53, %v3571_v58  ;;  %v3579_v53 = vld [vmem:[%s4969_s4 + $0x6] ss:$0 sm:$0xff] }
 0xb87   :  { %v3204_v59 = vpop.f32.mrf.mxu0 }
 0xb88   :  { %v3227_v60 = vmul.f32 %v3571_v58, %v3204_v59  ;;  %v3236_v61 = vadd.f32 %v3572_v33, %v3228_v50 }
 0xb8a   :  { %v3235_v62 = vadd.f32 %v3572_v33, %v3227_v60  ;;  %v4886_v2 = vadd.f32 %v4189_v1, %v3236_v61 }
 0xb8c   :  { %v4881_v0 = vadd.f32 %v4188_v63, %v3235_v62 }
 0xb8d   :  { %v4043_v3 = vpop.f32.mrf.mxu0 }
 0xb8e   :  { %v3230_v5 = vmul.f32 %v4043_v3, %v3571_v58  ;;  %4060 = vmatprep.mubr.msk.f32.mxu1 %vm92_vm0, %v4881_v0 }
 0xb8f   :  { %v3214_v7 = vpop.f32.mrf.mxu0  ;;  %4061 = vmatmul.mubr.msk.f32.vlgmr.msra.gmra.mxu1 %vm92_vm0, %v4886_v2 }
 0xb90   :  { %v3229_v9 = vmul.f32 %v3571_v58, %v3214_v7  ;;  %v3238_v10 = vadd.f32 %v3572_v33, %v3230_v5  ;;  %v3578_v58 = vld [vmem:[%s4969_s4 + $0x5] ss:$0 sm:$0xff]  ;;  %s4223_s4 = smov [#allocation2]  }
 0xb91   :  { %s3478_s9 = sshll.u32 %s4223_s4, 4  ;;  %s3479_s9 = int_to_ptr.vmem [resolvable:$true] %s3478_s9 }
 0xb92   :  { %v3237_v28 = vadd.f32 %v3572_v33, %v3229_v9  ;;  %v4900_v15 = vadd.f32 %v4191_v14, %v3238_v10  ;;  %s4192_s0 = scalar_lea.vmem %s3479_s9, 512  ;;  %p4197_p1 = scmp.lt.s32.totalorder %s3479_s9, %s3479_s9 }
 0xb93   :  { %p4193_p0 = scmp.ne.s32.totalorder %s3479_s9, %s4192_s0  ;;  %p4198_p2 = scmp.lt.s32.totalorder %s4192_s0, %s4192_s0 }
 0xb94   :  { %v4895_v13 = vadd.f32 %v4190_v12, %v3237_v28 }
 0xb95   :  { %p4199_p3 = por %p4198_p2, %p4197_p1 }
 0xb96   :  { %4063 = vmatprep.mubr.msk.f32.mxu1 %vm92_vm0, %v4895_v13 }
 0xb97   :  { %4064 = vmatmul.mubr.msk.f32.gmra.mxu1 %vm92_vm0, %v4900_v15  ;;  %p4200_p4 = pnand %p4199_p3, %p4193_p0 }
 0xc4f   :  { %v4062_v40 = vpop.f32.mrf.mxu1 }
 0xc50   :  { %v3331_v27 = vadd.f32 %v4062_v40, %v3573_v26 }
 0xc51   :  { %v3325_v37 = vpop.f32.mrf.mxu1 }
 0xc52   :  { %v3349_v29 = vmul.f32 0.70710677, %v3331_v27  ;;  %v3326_v46 = vadd.f32 %v3573_v26, %v3325_v37  ;;  %v3345_v30 = vmul.f32 0.5, %v3331_v27 }
 0xc54   :  { %4180 = verf.f32 %v3349_v29  ;;  %v3348_v31 = vmul.f32 0.70710677, %v3326_v46  ;;  %v3344_v39 = vmul.f32 0.5, %v3326_v46 }
 0xc56   :  { %4182 = verf.f32 %v3348_v31 }
 0xc57   :  { %v4065_v49 = vpop.f32.mrf.mxu1 }
 0xc58   :  { %v3341_v35 = vadd.f32 %v4065_v49, %v3573_v26 }
 0xc59   :  { %v3335_v44 = vpop.f32.mrf.mxu1 }
 0xc5a   :  { %v3351_v34 = vmul.f32 0.70710677, %v3341_v35  ;;  %v3336_v36 = vadd.f32 %v3573_v26, %v3335_v44  ;;  %v3347_v55 = vmul.f32 0.5, %v3341_v35 }
 0xc5c   :  { %4184 = verf.f32 %v3351_v34  ;;  %v3350_v4 = vmul.f32 0.70710677, %v3336_v36  ;;  %v3346_v45 = vmul.f32 0.5, %v3336_v36 }
 0xc5e   :  { %4186 = verf.f32 %v3350_v4 }
 0xc61   :  { %v4181_v54 = vpop.eup %4180 }
 0xc62   :  { %v3357_v38 = vadd.f32 1.0, %v4181_v54 }
 0xc63   :  { %v4183_v47 = vpop.eup %4182 }
 0xc64   :  { %v3356_v6 = vadd.f32 1.0, %v4183_v47  ;;  %v3361_v8 = vmul.f32 %v3357_v38, %v3345_v30 }
 0xc66   :  { %v3360_v41 = vmul.f32 %v3356_v6, %v3344_v39 }
 0xc68   :  { %4098 = vmatprep.mubr.f32.mxu0 %v3360_v41 }
 0xc69   :  { %v4185_v32 = vpop.eup %4184  ;;  %4099 = vmatmul.mubr.f32.vlgmr.msra.gmra.mxu0 %v3361_v8 }
 0xc6a   :  { %v3359_v11 = vadd.f32 1.0, %v4185_v32 }
 0xc6b   :  { %v4187_v43 = vpop.eup %4186 }
 0xc6c   :  { %v3358_v48 = vadd.f32 1.0, %v4187_v43  ;;  %v3363_v57 = vmul.f32 %v3359_v11, %v3347_v55 }
 0xc6e   :  { %v3362_v56 = vmul.f32 %v3358_v48, %v3346_v45 }
 0xc70   :  { %4101 = vmatprep.mubr.f32.mxu0 %v3362_v56 }
 0xc71   :  { %4102 = vmatmul.mubr.f32.gmra.mxu0 %v3363_v57 }
 0xd29   :  { %v4100_v33 = vpop.f32.mrf.mxu0 }
 0xd2a   :  { %v3454_v50 = vmul.f32 %v4100_v33, %v3578_v58 }
 0xd2b   :  { %v3430_v59 = vpop.f32.mrf.mxu0 }
 0xd2c   :  { %v3462_v60 = vadd.f32 %v3579_v53, %v3454_v50  ;;  %v3453_v61 = vmul.f32 %v3578_v58, %v3430_v59 }
 0xd2e   :  { %v3466_v62 = vadd.f32 %v3462_v60, %v4886_v2  ;;  %v3461_v63 = vadd.f32 %v3579_v53, %v3453_v61 }
 0xd30   :  { %3470 = vst.msk [vmem:[#allocation2 + $0x8] sm:$0xff] %vm92_vm0, %v3466_v62  ;;  %v3465_v1 = vadd.f32 %v3461_v63, %v4881_v0 }
 0xd31   :  { %v4103_v3 = vpop.f32.mrf.mxu0 }
 0xd32   :  { %3469 = vst.msk [vmem:[#allocation2] sm:$0xff] %vm92_vm0, %v3465_v1  ;;  %v3456_v5 = vmul.f32 %v4103_v3, %v3578_v58 }
 0xd33   :  { %v3440_v7 = vpop.f32.mrf.mxu0 }
 0xd34   :  { %v3464_v9 = vadd.f32 %v3579_v53, %v3456_v5  ;;  %v3455_v10 = vmul.f32 %v3578_v58, %v3440_v7 }
 0xd36   :  { %v3468_v28 = vadd.f32 %v3464_v9, %v4900_v15  ;;  %v3463_v12 = vadd.f32 %v3579_v53, %v3455_v10 }
 0xd38   :  { %3472 = vst.msk [vmem:[#allocation2 + $0x18] sm:$0xff] %vm92_vm0, %v3468_v28  ;;  %v3467_v2 = vadd.f32 %v3463_v12, %v4895_v13 }
 0xd3a   :  { %3471 = vst.msk [vmem:[#allocation2 + $0x10] sm:$0xff] %vm92_vm0, %v3467_v2 }
 0xd3b   :  { %4203 = shalt.err (!%p4200_p4)
}
 0xd3c   :  { %s4224_s10 = smov 128   ;;  %s4225_s11 = smov 8  }
 0xd3d   :  { %3484 = dma.vmem_to_hbm [thread:$0]  %s3479_s9, 512, %s4970_s5, [#allocation3], %s4224_s10, %s4224_s10, %s4225_s11  }
 0xd3e   :  { %4212 = dma.done.wait [#allocation3], 512  }
 0xd3f   :  { %4213 = vsyncadd [#allocation3], 4294966784 }
 0xd40   :  { %3488 = vsyncpa [#allocation3], 1 }

</bundles_post_ra>
